<compile_context>
chip_gen: v7x
topology: tpu7x:2x2x1
jax: 0.10.0
libtpu: 0.0.40
codegen_flags: <defaults>
</compile_context>

<pallas_src>
import jax
import jax.numpy as jnp
from jax import lax
from jax.experimental import pallas as pl
from jax.experimental.pallas import tpu as pltpu


# ----------------------------------------------------------------------------
# Fused kernel: per batch element
#   qkv = x @ W_qkv                         (1x1 conv)
#   per head: sim = (q*scale) @ (k + emb)^T ; softmax ; out = attn @ v
# ----------------------------------------------------------------------------
def make_fused_attention_kernel(scale, heads, dim_head):
    inner = heads * dim_head

    def kernel(x_ref, w_ref, emb_ref, o_ref, qkv_ref):
        # x_ref:   (1, n, c)        input pixels (channels-last)
        # w_ref:   (c, 3*inner)     1x1-conv weight, resident across the grid
        # emb_ref: (n, dim_head)    absolute positional embedding (height + width)
        # o_ref:   (1, n, inner)    output tile, lane-dense (inner = 128 here)
        # qkv_ref: (n, 3*inner)     VMEM scratch for the fused projection
        x = x_ref[0]
        # Fused 1x1 conv (per-pixel matmul) -> qkv for this batch element.
        qkv_ref[...] = jnp.dot(
            x, w_ref[...], preferred_element_type=jnp.float32
        )

        emb = emb_ref[...]

        # Short static (unrolled) loop over heads: each head reads a 32-lane
        # column group of the qkv scratch (MXU contraction dim = dim_head).
        head_outs = []
        for hh in range(heads):
            lo = hh * dim_head
            q = qkv_ref[:, lo:lo + dim_head] * scale
            k = qkv_ref[:, inner + lo:inner + lo + dim_head]
            v = qkv_ref[:, 2 * inner + lo:2 * inner + lo + dim_head]

            # q@k^T + q@emb^T == q@(k + emb)^T ; contract last dims directly
            # (no transposed operand materialized).
            ke = k + emb
            sim = lax.dot_general(
                q, ke,
                dimension_numbers=(((1,), (1,)), ((), ())),
                preferred_element_type=jnp.float32,
            )

            # Numerically-stable softmax; reciprocal goes to the EUP slot.
            sim = sim - jnp.max(sim, axis=-1, keepdims=True)
            p = jnp.exp(sim)
            inv = pl.reciprocal(
                jnp.sum(p, axis=-1, keepdims=True), approx=True
            )
            attn = p * inv

            head_outs.append(
                jnp.dot(attn, v, preferred_element_type=jnp.float32)
            )

        # Assemble all heads in registers and issue ONE unmasked, lane-dense
        # (n, inner) store (instead of `heads` masked 32-lane stores).
        o_ref[0] = jnp.concatenate(head_outs, axis=-1).astype(o_ref.dtype)

    return kernel


def fused_attention(x_bnc, w_qkv, emb, *, heads, dim_head, scale):
    # x_bnc: (b, n, c)   w_qkv: (c, 3*inner)   emb: (n, dim_head)
    b, n, c = x_bnc.shape
    inner = heads * dim_head
    out_dim = 3 * inner
    return pl.pallas_call(
        make_fused_attention_kernel(scale, heads, dim_head),
        out_shape=jax.ShapeDtypeStruct((b, n, inner), jnp.float32),
        grid_spec=pltpu.PrefetchScalarGridSpec(
            num_scalar_prefetch=0,
            grid=(b,),
            in_specs=[
                pl.BlockSpec((1, n, c), lambda i: (i, 0, 0)),
                pl.BlockSpec((c, out_dim), lambda i: (0, 0)),
                pl.BlockSpec((n, dim_head), lambda i: (0, 0)),
            ],
            out_specs=pl.BlockSpec((1, n, inner), lambda i: (i, 0, 0)),
            scratch_shapes=[pltpu.VMEM((n, out_dim), jnp.float32)],
        ),
        compiler_params=pltpu.CompilerParams(
            dimension_semantics=("parallel",),
            vmem_limit_bytes=32 * 1024 * 1024,
        ),
    )(x_bnc, w_qkv, emb)


# ----------------------------------------------------------------------------
# Module wrapper (parameter setup + reshapes in plain JAX)
# ----------------------------------------------------------------------------
def attention_forward(fmap_nchw, params, *, heads, dim_head):
    """fmap_nchw: (b, c, h, w) float32.  Returns (b, heads*dim_head, h, w)."""
    b, c, h, w = fmap_nchw.shape
    n = h * w
    inner = heads * dim_head
    scale = dim_head ** (-0.5)

    # NCHW -> (b, n, c)  (channels-last so the 1x1 conv is a plain matmul)
    x_bnc = jnp.transpose(fmap_nchw, (0, 2, 3, 1)).reshape(b, n, c)

    # 1x1 conv weight (3*inner, c, 1, 1) -> (c, 3*inner)
    w_qkv = params["conv_w"][:, :, 0, 0].T

    # AbsPosEmb: emb = height[:,None,:] + width[None,:,:] -> (h*w, dim_head)
    emb = (params["pos_h"][:, None, :] + params["pos_w"][None, :, :]).reshape(
        n, dim_head
    )

    out_bnc = fused_attention(
        x_bnc, w_qkv, emb, heads=heads, dim_head=dim_head, scale=scale
    )  # (b, n, heads*dim_head), channel layout = [head0 | head1 | ...]

    # 'b (x y) (h d) -> b (h d) x y'  (matches PyTorch 'b h (x y) d -> b (h d) x y')
    out = jnp.transpose(out_bnc, (0, 2, 1)).reshape(b, inner, h, w)
    return out


# ----------------------------------------------------------------------------
# Pure-JAX reference for correctness check
# ----------------------------------------------------------------------------
def attention_reference(fmap_nchw, params, *, heads, dim_head):
    b, c, h, w = fmap_nchw.shape
    n = h * w
    inner = heads * dim_head
    scale = dim_head ** (-0.5)
    x_bnc = jnp.transpose(fmap_nchw, (0, 2, 3, 1)).reshape(b, n, c)
    w_qkv = params["conv_w"][:, :, 0, 0].T
    qkv = x_bnc @ w_qkv
    q, k, v = jnp.split(qkv, 3, axis=-1)
    reh = lambda t: jnp.transpose(t.reshape(b, n, heads, dim_head), (0, 2, 1, 3))
    q, k, v = map(reh, (q, k, v))
    q = q * scale
    sim = jnp.einsum("bhid,bhjd->bhij", q, k)
    emb = (params["pos_h"][:, None, :] + params["pos_w"][None, :, :]).reshape(
        n, dim_head
    )
    sim = sim + jnp.einsum("bhid,jd->bhij", q, emb)
    attn = jax.nn.softmax(sim, axis=-1)
    out = jnp.einsum("bhij,bhjd->bhid", attn, v)
    out = out.reshape(b, heads, h, w, dim_head)
    return jnp.transpose(out, (0, 1, 4, 2, 3)).reshape(b, inner, h, w)


if __name__ == "__main__":
    # Small, forward-consistent shapes (heads*dim_head = 128 -> lane-dense).
    B, DIM, FMAP = 2, 8, 8          # batch, channels, spatial (h = w = 8)
    HEADS, DIM_HEAD = 4, 32
    INNER = HEADS * DIM_HEAD

    key = jax.random.PRNGKey(0)
    k_x, k_conv, k_ph, k_pw = jax.random.split(key, 4)

    fmap = jax.random.normal(k_x, (B, DIM, FMAP, FMAP), dtype=jnp.float32)

    pos_scale = DIM_HEAD ** (-0.5)
    params = {
        # nn.Conv2d(dim, inner*3, 1, bias=False) weight: (out, in, 1, 1)
        "conv_w": jax.random.normal(
            k_conv, (INNER * 3, DIM, 1, 1), dtype=jnp.float32
        )
        * 0.05,
        # AbsPosEmb parameters: randn(height, dim_head)*scale, randn(width, dim_head)*scale
        "pos_h": jax.random.normal(k_ph, (FMAP, DIM_HEAD), dtype=jnp.float32)
        * pos_scale,
        "pos_w": jax.random.normal(k_pw, (FMAP, DIM_HEAD), dtype=jnp.float32)
        * pos_scale,
    }

    out = attention_forward(fmap, params, heads=HEADS, dim_head=DIM_HEAD)
    out = jax.block_until_ready(out)

    ref = attention_reference(fmap, params, heads=HEADS, dim_head=DIM_HEAD)
    assert out.shape == (B, INNER, FMAP, FMAP), out.shape
    # Tolerance slightly loosened for the EUP approximate reciprocal in the
    # softmax normalization (f32 accumulation everywhere else).
    assert jnp.allclose(out, ref, atol=2e-3, rtol=2e-3), (
        float(jnp.max(jnp.abs(out - ref)))
    )

    print("KERNEL_OK")
</pallas_src>

<mosaic_0001>
module attributes {stable_mosaic.version = 11 : i64} {
  func.func @kernel(%arg0: i32, %arg1: memref<1x64x8xf32, #tpu.memory_space<vmem>>, %arg2: memref<8x384xf32, #tpu.memory_space<vmem>>, %arg3: memref<64x32xf32, #tpu.memory_space<vmem>>, %arg4: memref<1x64x128xf32, #tpu.memory_space<vmem>>, %arg5: memref<64x384xf32, #tpu.memory_space<vmem>>) attributes {dimension_semantics = [#tpu.dimension_semantics<parallel>], iteration_bounds = array<i64: 2>, scalar_prefetch = 0 : i64, scratch_operands = 1 : i64, tpu.core_type = #tpu.core_type<tc>, window_params = [{transform_indices = @transform_0, window_bounds = array<i64: 1, 64, 8>}, {pipeline_mode = #tpu.pipeline_mode<synchronous>, transform_indices = @transform_1, window_bounds = array<i64: 8, 384>}, {pipeline_mode = #tpu.pipeline_mode<synchronous>, transform_indices = @transform_2, window_bounds = array<i64: 64, 32>}, {transform_indices = @transform_3, window_bounds = array<i64: 1, 64, 128>}]} {
    %c0 = arith.constant 0 : index
    %c0_0 = arith.constant 0 : index
    %c0_1 = arith.constant 0 : index
    %0 = vector.load %arg1[%c0, %c0_0, %c0_1] : memref<1x64x8xf32, #tpu.memory_space<vmem>>, vector<1x64x8xf32>
    %1 = vector.shape_cast %0 : vector<1x64x8xf32> to vector<64x8xf32>
    %c0_2 = arith.constant 0 : index
    %c0_3 = arith.constant 0 : index
    %2 = vector.load %arg2[%c0_2, %c0_3] : memref<8x384xf32, #tpu.memory_space<vmem>>, vector<8x384xf32>
    %cst = arith.constant dense<0.000000e+00> : vector<64x384xf32>
    %3 = tpu.matmul %1, %2, %cst {dimension_numbers = #tpu.dot_dimension_numbers<[1], [0], [0], [1], [0, 0, 1, 1], [], []>} : vector<64x8xf32>, vector<8x384xf32>, vector<64x384xf32> -> vector<64x384xf32>
    %c0_4 = arith.constant 0 : index
    %c0_5 = arith.constant 0 : index
    %4 = vector.load %arg5[%c0_4, %c0_5] : memref<64x384xf32, #tpu.memory_space<vmem>>, vector<64x384xf32>
    tpu.vector_store %arg5[%c0_4, %c0_5], %3 {strides = array<i32>} : memref<64x384xf32, #tpu.memory_space<vmem>>, vector<64x384xf32>,
    %c0_6 = arith.constant 0 : index
    %c0_7 = arith.constant 0 : index
    %5 = vector.load %arg3[%c0_6, %c0_7] : memref<64x32xf32, #tpu.memory_space<vmem>>, vector<64x32xf32>
    %c0_8 = arith.constant 0 : index
    %c0_9 = arith.constant 0 : index
    %6 = vector.load %arg5[%c0_8, %c0_9] : memref<64x384xf32, #tpu.memory_space<vmem>>, vector<64x32xf32>
    %cst_10 = arith.constant 0.176776692 : f32
    %7 = vector.broadcast %cst_10 : f32 to vector<64x32xf32>
    %8 = arith.mulf %6, %7 : vector<64x32xf32>
    %c0_11 = arith.constant 0 : index
    %c128 = arith.constant 128 : index
    %9 = vector.load %arg5[%c0_11, %c128] : memref<64x384xf32, #tpu.memory_space<vmem>>, vector<64x32xf32>
    %c0_12 = arith.constant 0 : index
    %c256 = arith.constant 256 : index
    %10 = vector.load %arg5[%c0_12, %c256] : memref<64x384xf32, #tpu.memory_space<vmem>>, vector<64x32xf32>
    %11 = arith.addf %9, %5 : vector<64x32xf32>
    %cst_13 = arith.constant dense<0.000000e+00> : vector<64x64xf32>
    %12 = tpu.matmul %8, %11, %cst_13 {dimension_numbers = #tpu.dot_dimension_numbers<[1], [1], [0], [0], [0, 0, 1, 0], [], []>} : vector<64x32xf32>, vector<64x32xf32>, vector<64x64xf32> -> vector<64x64xf32>
    %cst_14 = arith.constant dense<0xFF800000> : vector<64xf32>
    %13 = vector.multi_reduction <maximumf>, %12, %cst_14 [1] : vector<64x64xf32> to vector<64xf32>
    %14 = vector.shape_cast %13 : vector<64xf32> to vector<64x1xf32>
    %15 = vector.broadcast %14 : vector<64x1xf32> to vector<64x64xf32>
    %16 = arith.subf %12, %15 : vector<64x64xf32>
    %17 = math.exp %16 : vector<64x64xf32>
    %cst_15 = arith.constant dense<0.000000e+00> : vector<64xf32>
    %18 = vector.multi_reduction <add>, %17, %cst_15 [1] : vector<64x64xf32> to vector<64xf32>
    %19 = vector.shape_cast %18 : vector<64xf32> to vector<64x1xf32>
    %20 = tpu.reciprocal %19 {approx = true} : vector<64x1xf32> -> vector<64x1xf32>
    %21 = vector.broadcast %20 : vector<64x1xf32> to vector<64x64xf32>
    %22 = arith.mulf %17, %21 : vector<64x64xf32>
    %cst_16 = arith.constant dense<0.000000e+00> : vector<64x32xf32>
    %23 = tpu.matmul %22, %10, %cst_16 {dimension_numbers = #tpu.dot_dimension_numbers<[1], [0], [0], [1], [0, 0, 1, 1], [], []>} : vector<64x64xf32>, vector<64x32xf32>, vector<64x32xf32> -> vector<64x32xf32>
    %c0_17 = arith.constant 0 : index
    %c32 = arith.constant 32 : index
    %24 = vector.load %arg5[%c0_17, %c32] : memref<64x384xf32, #tpu.memory_space<vmem>>, vector<64x32xf32>
    %cst_18 = arith.constant 0.176776692 : f32
    %25 = vector.broadcast %cst_18 : f32 to vector<64x32xf32>
    %26 = arith.mulf %24, %25 : vector<64x32xf32>
    %c0_19 = arith.constant 0 : index
    %c160 = arith.constant 160 : index
    %27 = vector.load %arg5[%c0_19, %c160] : memref<64x384xf32, #tpu.memory_space<vmem>>, vector<64x32xf32>
    %c0_20 = arith.constant 0 : index
    %c288 = arith.constant 288 : index
    %28 = vector.load %arg5[%c0_20, %c288] : memref<64x384xf32, #tpu.memory_space<vmem>>, vector<64x32xf32>
    %29 = arith.addf %27, %5 : vector<64x32xf32>
    %cst_21 = arith.constant dense<0.000000e+00> : vector<64x64xf32>
    %30 = tpu.matmul %26, %29, %cst_21 {dimension_numbers = #tpu.dot_dimension_numbers<[1], [1], [0], [0], [0, 0, 1, 0], [], []>} : vector<64x32xf32>, vector<64x32xf32>, vector<64x64xf32> -> vector<64x64xf32>
    %cst_22 = arith.constant dense<0xFF800000> : vector<64xf32>
    %31 = vector.multi_reduction <maximumf>, %30, %cst_22 [1] : vector<64x64xf32> to vector<64xf32>
    %32 = vector.shape_cast %31 : vector<64xf32> to vector<64x1xf32>
    %33 = vector.broadcast %32 : vector<64x1xf32> to vector<64x64xf32>
    %34 = arith.subf %30, %33 : vector<64x64xf32>
    %35 = math.exp %34 : vector<64x64xf32>
    %cst_23 = arith.constant dense<0.000000e+00> : vector<64xf32>
    %36 = vector.multi_reduction <add>, %35, %cst_23 [1] : vector<64x64xf32> to vector<64xf32>
    %37 = vector.shape_cast %36 : vector<64xf32> to vector<64x1xf32>
    %38 = tpu.reciprocal %37 {approx = true} : vector<64x1xf32> -> vector<64x1xf32>
    %39 = vector.broadcast %38 : vector<64x1xf32> to vector<64x64xf32>
    %40 = arith.mulf %35, %39 : vector<64x64xf32>
    %cst_24 = arith.constant dense<0.000000e+00> : vector<64x32xf32>
    %41 = tpu.matmul %40, %28, %cst_24 {dimension_numbers = #tpu.dot_dimension_numbers<[1], [0], [0], [1], [0, 0, 1, 1], [], []>} : vector<64x64xf32>, vector<64x32xf32>, vector<64x32xf32> -> vector<64x32xf32>
    %c0_25 = arith.constant 0 : index
    %c64 = arith.constant 64 : index
    %42 = vector.load %arg5[%c0_25, %c64] : memref<64x384xf32, #tpu.memory_space<vmem>>, vector<64x32xf32>
    %cst_26 = arith.constant 0.176776692 : f32
    %43 = vector.broadcast %cst_26 : f32 to vector<64x32xf32>
    %44 = arith.mulf %42, %43 : vector<64x32xf32>
    %c0_27 = arith.constant 0 : index
    %c192 = arith.constant 192 : index
    %45 = vector.load %arg5[%c0_27, %c192] : memref<64x384xf32, #tpu.memory_space<vmem>>, vector<64x32xf32>
    %c0_28 = arith.constant 0 : index
    %c320 = arith.constant 320 : index
    %46 = vector.load %arg5[%c0_28, %c320] : memref<64x384xf32, #tpu.memory_space<vmem>>, vector<64x32xf32>
    %47 = arith.addf %45, %5 : vector<64x32xf32>
    %cst_29 = arith.constant dense<0.000000e+00> : vector<64x64xf32>
    %48 = tpu.matmul %44, %47, %cst_29 {dimension_numbers = #tpu.dot_dimension_numbers<[1], [1], [0], [0], [0, 0, 1, 0], [], []>} : vector<64x32xf32>, vector<64x32xf32>, vector<64x64xf32> -> vector<64x64xf32>
    %cst_30 = arith.constant dense<0xFF800000> : vector<64xf32>
    %49 = vector.multi_reduction <maximumf>, %48, %cst_30 [1] : vector<64x64xf32> to vector<64xf32>
    %50 = vector.shape_cast %49 : vector<64xf32> to vector<64x1xf32>
    %51 = vector.broadcast %50 : vector<64x1xf32> to vector<64x64xf32>
    %52 = arith.subf %48, %51 : vector<64x64xf32>
    %53 = math.exp %52 : vector<64x64xf32>
    %cst_31 = arith.constant dense<0.000000e+00> : vector<64xf32>
    %54 = vector.multi_reduction <add>, %53, %cst_31 [1] : vector<64x64xf32> to vector<64xf32>
    %55 = vector.shape_cast %54 : vector<64xf32> to vector<64x1xf32>
    %56 = tpu.reciprocal %55 {approx = true} : vector<64x1xf32> -> vector<64x1xf32>
    %57 = vector.broadcast %56 : vector<64x1xf32> to vector<64x64xf32>
    %58 = arith.mulf %53, %57 : vector<64x64xf32>
    %cst_32 = arith.constant dense<0.000000e+00> : vector<64x32xf32>
    %59 = tpu.matmul %58, %46, %cst_32 {dimension_numbers = #tpu.dot_dimension_numbers<[1], [0], [0], [1], [0, 0, 1, 1], [], []>} : vector<64x64xf32>, vector<64x32xf32>, vector<64x32xf32> -> vector<64x32xf32>
    %c0_33 = arith.constant 0 : index
    %c96 = arith.constant 96 : index
    %60 = vector.load %arg5[%c0_33, %c96] : memref<64x384xf32, #tpu.memory_space<vmem>>, vector<64x32xf32>
    %cst_34 = arith.constant 0.176776692 : f32
    %61 = vector.broadcast %cst_34 : f32 to vector<64x32xf32>
    %62 = arith.mulf %60, %61 : vector<64x32xf32>
    %c0_35 = arith.constant 0 : index
    %c224 = arith.constant 224 : index
    %63 = vector.load %arg5[%c0_35, %c224] : memref<64x384xf32, #tpu.memory_space<vmem>>, vector<64x32xf32>
    %c0_36 = arith.constant 0 : index
    %c352 = arith.constant 352 : index
    %64 = vector.load %arg5[%c0_36, %c352] : memref<64x384xf32, #tpu.memory_space<vmem>>, vector<64x32xf32>
    %65 = arith.addf %63, %5 : vector<64x32xf32>
    %cst_37 = arith.constant dense<0.000000e+00> : vector<64x64xf32>
    %66 = tpu.matmul %62, %65, %cst_37 {dimension_numbers = #tpu.dot_dimension_numbers<[1], [1], [0], [0], [0, 0, 1, 0], [], []>} : vector<64x32xf32>, vector<64x32xf32>, vector<64x64xf32> -> vector<64x64xf32>
    %cst_38 = arith.constant dense<0xFF800000> : vector<64xf32>
    %67 = vector.multi_reduction <maximumf>, %66, %cst_38 [1] : vector<64x64xf32> to vector<64xf32>
    %68 = vector.shape_cast %67 : vector<64xf32> to vector<64x1xf32>
    %69 = vector.broadcast %68 : vector<64x1xf32> to vector<64x64xf32>
    %70 = arith.subf %66, %69 : vector<64x64xf32>
    %71 = math.exp %70 : vector<64x64xf32>
    %cst_39 = arith.constant dense<0.000000e+00> : vector<64xf32>
    %72 = vector.multi_reduction <add>, %71, %cst_39 [1] : vector<64x64xf32> to vector<64xf32>
    %73 = vector.shape_cast %72 : vector<64xf32> to vector<64x1xf32>
    %74 = tpu.reciprocal %73 {approx = true} : vector<64x1xf32> -> vector<64x1xf32>
    %75 = vector.broadcast %74 : vector<64x1xf32> to vector<64x64xf32>
    %76 = arith.mulf %71, %75 : vector<64x64xf32>
    %cst_40 = arith.constant dense<0.000000e+00> : vector<64x32xf32>
    %77 = tpu.matmul %76, %64, %cst_40 {dimension_numbers = #tpu.dot_dimension_numbers<[1], [0], [0], [1], [0, 0, 1, 1], [], []>} : vector<64x64xf32>, vector<64x32xf32>, vector<64x32xf32> -> vector<64x32xf32>
    %78 = tpu.concatenate %23, %41, %59, %77 in 1 : vector<64x32xf32>, vector<64x32xf32>, vector<64x32xf32>, vector<64x32xf32> -> vector<64x128xf32>
    %c0_41 = arith.constant 0 : index
    %c0_42 = arith.constant 0 : index
    %c0_43 = arith.constant 0 : index
    %79 = vector.load %arg4[%c0_41, %c0_42, %c0_43] : memref<1x64x128xf32, #tpu.memory_space<vmem>>, vector<1x64x128xf32>
    %80 = vector.shape_cast %79 : vector<1x64x128xf32> to vector<64x128xf32>
    %81 = vector.shape_cast %78 : vector<64x128xf32> to vector<1x64x128xf32>
    tpu.vector_store %arg4[%c0_41, %c0_42, %c0_43], %81 {strides = array<i32>} : memref<1x64x128xf32, #tpu.memory_space<vmem>>, vector<1x64x128xf32>,
    return
  }
  func.func @transform_0(%arg0: i32) -> (i32, i32, i32) {
    %c0_i32 = arith.constant 0 : i32
    %c0_i32_0 = arith.constant 0 : i32
    %c0_i32_1 = arith.constant 0 : i32
    return %arg0, %c0_i32, %c0_i32_0 : i32, i32, i32
  }
  func.func @transform_1(%arg0: i32) -> (i32, i32) {
    %c0_i32 = arith.constant 0 : i32
    %c0_i32_0 = arith.constant 0 : i32
    %c0_i32_1 = arith.constant 0 : i32
    return %c0_i32, %c0_i32_0 : i32, i32
  }
  func.func @transform_2(%arg0: i32) -> (i32, i32) {
    %c0_i32 = arith.constant 0 : i32
    %c0_i32_0 = arith.constant 0 : i32
    %c0_i32_1 = arith.constant 0 : i32
    return %c0_i32, %c0_i32_0 : i32, i32
  }
  func.func @transform_3(%arg0: i32) -> (i32, i32, i32) {
    %c0_i32 = arith.constant 0 : i32
    %c0_i32_0 = arith.constant 0 : i32
    %c0_i32_1 = arith.constant 0 : i32
    return %arg0, %c0_i32, %c0_i32_0 : i32, i32, i32
  }
}

</mosaic_0001>

<bundles_post_ra>
// kernel: tpu_custom_call.1
= control target key start
LH: loop header
LB: loop body
LE: loop exit
PB: predicated region body
PF: predicated region fallthrough
CT: control target
= control target key end

     0   :  { %8 = vsyncpa [#allocation4], 0  ;;  %s4454_s0 = inlined_call_operand.vmem [shape: f32[2,64,8], index: 0, kind: input, shape index: {}]   ;;  %s4455_s1 = inlined_call_operand.vmem [shape: f32[8,384], index: 1, kind: input, shape index: {}]   ;;  %s4456_s2 = inlined_call_operand.vmem [shape: f32[64,32], index: 2, kind: input, shape index: {}]   ;;  %s4457_s3 = inlined_call_operand.hbm [shape: f32[2,64,128], index: 3, kind: output, shape index: {}]  }
   0x1   :  { %10 = vsyncpa [#allocation4 + $0x1], 0  ;;  %s3485_s12 = smov 0   ;;  %s3487_s13 = smov 0  }
   0x2   :  { %s3489_s14 = smov 0   ;;  %s3491_s15 = smov 0  }
   0x3 LB: > { %s3506_s16 = sadd.s32 4294967295, %s3456_s15   ;;  %s2438_s17 = sadd.s32 4294967294, %s3456_s15   ;;  %s3456_s15 = sphi %s3491_s15, %s4467_s15   ;;  %s3452_s14 = sphi %s3489_s14, %s4466_s14   ;;  %s3448_s13 = sphi %s3487_s13, %s4465_s13   ;;  %s3444_s12 = sphi %s3485_s12, %s4464_s12  }
   0x4   : > { %s3510_s18 = sadd.s32 1, %s3456_s15   ;;  %s91_s19 = sadd.s32 1, %s3452_s14 }
   0x5   : > { %s88_s20 = ssub.s32 %s3456_s15, %s3510_s18  ;;  %p101_p0 = scmp.ne.s32.totalorder %s3452_s14, %s3448_s13 }
   0x6   : > { %p89_p1 = scmp.eq.s32.totalorder %s88_s20, 0  ;;  %p102_p2 = scmp.eq.s32.totalorder %s3506_s16, 1 }
   0x7   : > { %p107_p3 = scmp.ne.s32.totalorder %s3448_s13, %s3444_s12  ;;  %p108_p4 = scmp.eq.s32.totalorder %s2438_s17, 1 }
   0x8   : > { %s3521_s21 = scalar_select %p89_p1, %s3452_s14, %s91_s19  }
   0x9   : > { %p3523_p5 = por %p102_p2, %p101_p0  ;;  %p3527_p6 = por %p108_p4, %p107_p3 }
   0xa   : > { %p2441_p7 = scmp.ge.s32.totalorder %s3456_s15, 1  ;;  %p140_p8 = scmp.lt.s32.totalorder %s3456_s15, 3 }
   0xc   : > { %p141_p9 = pnand %p2441_p7, %p140_p8 }
   0xd   : > { %v178_v0 = vld [vmem:[%s4455_s1 + $0x8] sm:$0xff] (!%p141_p9)  ;;  %v177_v1 = vld [vmem:[%s4455_s1] sm:$0xff] (!%p141_p9)  ;;  %p164_p10 = scmp.lt.s32.totalorder (!%p141_p9), %s3506_s16, 1  ;;  %v3458_v3 = vmov (!%p141_p9), 0.0   ;;  %s3459_s4 = smov (!%p141_p9), 32   ;;  %v3551_v4 = vld [vmem:[%s4456_s2 + $0x10] sm:$0xff] (!%p141_p9) }
   0xe   : > { %144 = sbr.rel (%p141_p9) target bundleno = 3093 (0xc15), region = 32  ;;  %v3543_v2 = vld [vmem:[%s4456_s2 + $0x8] sm:$0xff] (!%p141_p9)  ;;  %205 = vmatprep.subr.mxu0 (!%p141_p9), %v178_v0  ;;  %269 = vmatprep.mubr.f32.mxu0 (!%p141_p9), %v3458_v3  ;;  %vm180_vm0 = vcmask (!%p141_p9), 64512   ;;  %v3562_v6 = vld [vmem:[%s4456_s2 + $0x18] sm:$0xff] (!%p141_p9)  ;;  %vm495_vm1 = vcmask (!%p141_p9), 261120   ;;  %v3604_v18 = vld [vmem:[%s4456_s2] sm:$0xff] (!%p141_p9) }
   0xf   : > { %206 = vmatpush1.msra.mxu0 (!%p141_p9), %v177_v1  ;;  %877 = vrot.lane.b32.xlu1 (!%p141_p9), %v3543_v2, %s3459_s4  ;;  %vm3616_vm2 = vmpackc.low (!%p141_p9), %vm495_vm1, %vm495_vm1  ;;  %v3647_v39 = vld [vmem:[%s4456_s2 + $0x20] sm:$0xff] (!%p141_p9)  ;;  %v3654_v40 = vld [vmem:[%s4456_s2 + $0x28] sm:$0xff] (!%p141_p9)  ;;  %vm649_vm3 = vcmask (!%p141_p9), 523264   ;;  %s3460_s8 = smov (!%p141_p9), 96   ;;  %s3461_s9 = smov (!%p141_p9), 64   ;;  %vm2345_vm4 = vcmask (!%p141_p9), 785408  }
  0x10   : > { %v3669_v48 = vld [vmem:[%s4456_s2 + $0x30] sm:$0xff] (!%p141_p9)  ;;  %v3676_v49 = vld [vmem:[%s4456_s2 + $0x38] sm:$0xff] (!%p141_p9)  ;;  %s2563_s25 = sshll.u32 (!%p141_p9), %s3506_s16, 10  ;;  %s3462_s5 = smov (!%p141_p9), [#allocation3]  }
  0x11   : > { %v179_v62 = vld [vmem:[%s4455_s1 + $0x10] sm:$0xff] (!%p141_p9)  ;;  %s3398_s6 = sshll.u32 (!%p141_p9), %s3462_s5, 4  ;;  %s3399_s6 = int_to_ptr.vmem [resolvable:$false] %s3398_s6 }
  0x12   : > { %2701 = vmatprep.subr.mxu1 (!%p141_p9), %v179_v62 }
  0x13   : > { %879 = vrot.lane.b32.xlu1 (!%p141_p9), %v3551_v4, %s3459_s4  ;;  %2702 = vmatpush3.msra.mxu1 (!%p141_p9), %v179_v62 }
  0x15   : > { %s165_s30 = scalar_select %p164_p10, %s3506_s16, 1 }
  0x16   : > { %s4402_s16 = scalar_lea.hbm %s4457_s3, %s2563_s25 }
  0x17   : > { %s2562_s7 = sshll.u32 %s165_s30, 6  ;;  %881 = vrot.lane.b32.xlu1 %v3562_v6, %s3459_s4 }
  0x18   : > { %s168_s10 = scalar_lea.vmem %s4454_s0, %s2562_s7  ;;  %s3400_s7 = scalar_lea.vmem %s3399_s6, 2048 }
  0x19   : > { %v169_v5 = vld [vmem:[%s168_s10] sm:$0xff]  ;;  %v3565_v7 = vld [vmem:[%s168_s10 + $0x8] sm:$0xff]  ;;  %v3571_v8 = vld [vmem:[%s168_s10 + $0x10] sm:$0xff] }
  0x1a   : > { %2445 = vmatmul.mubr.msk.f32.vlgmr.msra.gmra.mrb[0].mxu0 %vm180_vm0, %v169_v5  ;;  %2703 = vmatprep.mubr.msk.f32.mxu1 %vm180_vm0, %v169_v5  ;;  %v3575_v9 = vld [vmem:[%s168_s10 + $0x18] sm:$0xff]  ;;  %v3579_v10 = vld [vmem:[%s168_s10 + $0x20] sm:$0xff]  ;;  %v3583_v11 = vld [vmem:[%s168_s10 + $0x28] sm:$0xff] }
  0x1b   : > { %275 = vmatprep.mubr.f32.mxu0 %v3458_v3  ;;  %v3587_v12 = vld [vmem:[%s168_s10 + $0x30] sm:$0xff]  ;;  %v3591_v13 = vld [vmem:[%s168_s10 + $0x38] sm:$0xff]  ;;  %2704 = vmatmul.mubr.msk.f32.vlgmr.msra.gmra.mrb[0].mxu1 %vm180_vm0, %v3565_v7 }
  0x1c   : > { %2706 = vmatprep.mubr.msk.f32.mxu1 %vm180_vm0, %v3571_v8 }
  0x1e   : > { %2446 = vmatmul.mubr.msk.f32.gmra.mrb[2].mxu0 %vm180_vm0, %v3565_v7 }
  0x1f   : > { %281 = vmatprep.mubr.f32.mxu0 %v3458_v3  ;;  %2707 = vmatmul.mubr.msk.f32.gmra.mrb[2].mxu1 %vm180_vm0, %v3575_v9 }
  0x20   : > { %2709 = vmatprep.mubr.msk.f32.mxu1 %vm180_vm0, %v3579_v10 }
  0x22   : > { %2447 = vmatmul.mubr.msk.f32.gmra.mrb[4].mxu0 %vm180_vm0, %v3571_v8 }
  0x23   : > { %287 = vmatprep.mubr.f32.mxu0 %v3458_v3  ;;  %2710 = vmatmul.mubr.msk.f32.gmra.mrb[4].mxu1 %vm180_vm0, %v3583_v11 }
  0x24   : > { %2712 = vmatprep.mubr.msk.f32.mxu1 %vm180_vm0, %v3587_v12 }
  0x26   : > { %2448 = vmatmul.mubr.msk.f32.gmra.mrb[6].mxu0 %vm180_vm0, %v3575_v9 }
  0x27   : > { %293 = vmatprep.mubr.f32.mxu0 %v3458_v3  ;;  %2713 = vmatmul.mubr.msk.f32.gmra.mrb[6].mxu1 %vm180_vm0, %v3591_v13 }
  0x2a   : > { %2449 = vmatmul.mubr.msk.f32.gmra.mrb[8].mxu0 %vm180_vm0, %v3579_v10 }
  0x2b   : > { %299 = vmatprep.mubr.f32.mxu0 %v3458_v3 }
  0x2e   : > { %2450 = vmatmul.mubr.msk.f32.gmra.mrb[10].mxu0 %vm180_vm0, %v3583_v11 }
  0x2f   : > { %305 = vmatprep.mubr.f32.mxu0 %v3458_v3 }
  0x32   : > { %2451 = vmatmul.mubr.msk.f32.gmra.mrb[12].mxu0 %vm180_vm0, %v3587_v12 }
  0x33   : > { %311 = vmatprep.mubr.f32.mxu0 %v3458_v3 }
  0x36   : > { %2452 = vmatmul.mubr.msk.f32.gmra.mrb[14].mxu0 %vm180_vm0, %v3591_v13 }
  0x81   : > { %v3595_v14 = vpop.permute.xlu1 %877 }
  0x85   : > { %v880_v21 = vpop.permute.xlu1 %879 }
  0x89   : > { %v882_v28 = vpop.permute.xlu1 %881 }
  0xed   : > { %v271_v15 = vpop.f32.mrb[0].mxu0 }
  0xee   : > { %v3597_v16 = vmul.f32 0.17677669, %v271_v15  ;;  %v3599_v17 = vpop.f32.mrb[1].mxu0 }
  0xef   : > { %v487_v22 = vadd.f32 %v3604_v18, %v3599_v17 }
  0xf0   : > { %2731 = vmatprep.mubr.msk.f32.mxu0 %vm495_vm1, %v3597_v16 }
  0xf1   : > { %v277_v19 = vpop.f32.mrb[2].mxu0 }
  0xf2   : > { %v3608_v20 = vpop.f32.mrb[3].mxu0  ;;  %v3688_v55 = vmul.f32 0.17677669, %v277_v19 }
  0xf3   : > { %v488_v23 = vadd.f32 %v3543_v2, %v3608_v20 }
  0xf5   : > { %v283_v25 = vpop.f32.mrb[4].mxu0  ;;  %v2939_v26 = vpack.c.bf16 %v488_v23, %v487_v22  ;;  %v2705_v23 = vpop.f32.mrb[0].mxu1 }
  0xf6   : > { %v3620_v27 = vpop.f32.mrb[5].mxu0  ;;  %v3690_v56 = vmul.f32 0.17677669, %v283_v25  ;;  %v384_v25 = vpop.f32.mrb[1].mxu1 }
  0xf7   : > { %2941 = vmatprep.subr.msk.bf16.mxu0 %vm3616_vm2, %v2939_v26  ;;  %v489_v31 = vadd.f32 %v3551_v4, %v3620_v27  ;;  %v3631_v32 = vadd.f32 %v880_v21, %v3620_v27 }
  0xf8   : > { %2944 = vmatpush3.bf16.xpose.msk.msra.mxu0 %vm3616_vm2, %v2939_v26  ;;  %v3773_v26 = vpack.i.bf16 %v2705_v23, %v384_v25 }
  0xf9   : > { %v289_v29 = vpop.f32.mrb[6].mxu0 }
  0xfa   : > { %v3626_v30 = vpop.f32.mrb[7].mxu0  ;;  %v3696_v57 = vmul.f32 0.17677669, %v289_v29  ;;  %v2708_v29 = vpop.f32.mrb[2].mxu1 }
  0xfb   : > { %v490_v33 = vadd.f32 %v3562_v6, %v3626_v30  ;;  %v3636_v34 = vadd.f32 %v882_v28, %v3626_v30  ;;  %v2963_v28 = vpack.c.bf16 %v2705_v23, %v384_v25 }
  0xfd   : > { %v295_v35 = vpop.f32.mrb[8].mxu0  ;;  %v2945_v36 = vpack.c.bf16 %v490_v33, %v489_v31  ;;  %v3149_v37 = vpack.i.bf16 %v3636_v34, %v3631_v32  ;;  %2964 = vmatprep.subr.bf16.mxu1 %v2963_v28  ;;  %v394_v31 = vpop.f32.mrb[3].mxu1 }
  0xfe   : > { %v3640_v38 = vpop.f32.mrb[9].mxu0  ;;  %v3698_v58 = vmul.f32 0.17677669, %v295_v35  ;;  %2966 = vmatpush3.bf16.msra.mxu1 %v2963_v28  ;;  %v3775_v32 = vpack.i.bf16 %v2708_v29, %v394_v31  ;;  %v2967_v33 = vpack.c.bf16 %v2708_v29, %v394_v31  ;;  %v2711_v34 = vpop.f32.mrb[4].mxu1 }
  0xff   : > { %2947 = vmatprep.subr.msk.bf16.mxu0 %vm3616_vm2, %v2945_v36  ;;  %v491_v43 = vadd.f32 %v3647_v39, %v3640_v38  ;;  %v404_v35 = vpop.f32.mrb[5].mxu1 }
 0x100   : > { %2950 = vmatpush3.bf16.xpose.msk.msra.mxu0 %vm3616_vm2, %v2945_v36  ;;  %2968 = vmatprep.subr.bf16.mxu1 %v2967_v33  ;;  %v3777_v36 = vpack.i.bf16 %v2711_v34, %v404_v35 }
 0x101   : > { %v301_v41 = vpop.f32.mrb[10].mxu0 }
 0x102   : > { %v3656_v42 = vpop.f32.mrb[11].mxu0  ;;  %v3704_v59 = vmul.f32 0.17677669, %v301_v41  ;;  %2970 = vmatpush3.bf16.msra.mxu1 %v2967_v33  ;;  %v2714_v41 = vpop.f32.mrb[6].mxu1 }
 0x103   : > { %v492_v44 = vadd.f32 %v3654_v40, %v3656_v42 }
 0x105   : > { %v307_v45 = vpop.f32.mrb[12].mxu0  ;;  %v2951_v46 = vpack.c.bf16 %v492_v44, %v491_v43  ;;  %v414_v43 = vpop.f32.mrb[7].mxu1 }
 0x106   : > { %v3662_v47 = vpop.f32.mrb[13].mxu0  ;;  %v3706_v60 = vmul.f32 0.17677669, %v307_v45  ;;  %v3779_v45 = vpack.i.bf16 %v2714_v41, %v414_v43 }
 0x107   : > { %2953 = vmatprep.subr.msk.bf16.mxu0 %vm3616_vm2, %v2951_v46  ;;  %v493_v52 = vadd.f32 %v3669_v48, %v3662_v47 }
 0x108   : > { %2956 = vmatpush3.bf16.xpose.msk.msra.mxu0 %vm3616_vm2, %v2951_v46 }
 0x109   : > { %v313_v50 = vpop.f32.mrb[14].mxu0 }
 0x10a   : > { %v3678_v51 = vpop.f32.mrb[15].mxu0  ;;  %v3712_v61 = vmul.f32 0.17677669, %v313_v50  ;;  %v2975_v50 = vpack.c.bf16 %v2714_v41, %v414_v43 }
 0x10b   : > { %v494_v53 = vadd.f32 %v3676_v49, %v3678_v51 }
 0x10d   : > { %v2957_v54 = vpack.c.bf16 %v494_v53, %v493_v52 }
 0x10f   : > { %2959 = vmatprep.subr.msk.bf16.mxu0 %vm3616_vm2, %v2957_v54 }
 0x110   : > { %2962 = vmatpush3.bf16.xpose.msk.msra.mxu0 %vm3616_vm2, %v2957_v54 }
 0x117   : > { %2732 = vmatmul.mubr.msk.f32.vlgmr.msra.gmra.mrb[16].mxu0 %vm495_vm1, %v3688_v55 }
 0x118   : > { %2734 = vmatprep.mubr.msk.f32.mxu0 %vm495_vm1, %v3690_v56 }
 0x11b   : > { %2735 = vmatmul.mubr.msk.f32.gmra.mrb[18].mxu0 %vm495_vm1, %v3696_v57 }
 0x11c   : > { %2737 = vmatprep.mubr.msk.f32.mxu0 %vm495_vm1, %v3698_v58 }
 0x11f   : > { %2738 = vmatmul.mubr.msk.f32.gmra.mrb[20].mxu0 %vm495_vm1, %v3704_v59 }
 0x120   : > { %2740 = vmatprep.mubr.msk.f32.mxu0 %vm495_vm1, %v3706_v60 }
 0x123   : > { %2741 = vmatmul.mubr.msk.f32.gmra.mrb[22].mxu0 %vm495_vm1, %v3712_v61 }
 0x1ea   : > { %v2733_v63 = vpop.f32.mrb[16].mxu0 }
 0x1eb   : > { %v3733_v0 = vpop.f32.mrb[17].mxu0  ;;  %v653_v1 = vsel %vm649_vm3, %v2733_v63, -inf }
 0x1ec   : > { %654 = vmax.xlane.f32.xlu0 %v653_v1  ;;  %v650_v7 = vsel %vm649_vm3, %v3733_v0, -inf }
 0x1ee   : > { %v3736_v3 = vpop.f32.mrb[18].mxu0 }
 0x1ef   : > { %v3738_v5 = vpop.f32.mrb[19].mxu0  ;;  %v659_v8 = vsel %vm649_vm3, %v3736_v3, -inf }
 0x1f0   : > { %651 = vmax.xlane.f32.xlu0 %v650_v7  ;;  %660 = vmax.xlane.f32.xlu1 %v659_v8  ;;  %v656_v11 = vsel %vm649_vm3, %v3738_v5, -inf  ;;  %v900_v7 = vadd.f32 %v3595_v14, %v3608_v20 }
 0x1f2   : > { %v2739_v9 = vpop.f32.mrb[20].mxu0 }
 0x1f3   : > { %v3744_v10 = vpop.f32.mrb[21].mxu0  ;;  %v665_v15 = vsel %vm649_vm3, %v2739_v9, -inf }
 0x1f4   : > { %657 = vmax.xlane.f32.xlu1 %v656_v11  ;;  %v662_v21 = vsel %vm649_vm3, %v3744_v10, -inf }
 0x1f6   : > { %v3748_v12 = vpop.f32.mrb[22].mxu0 }
 0x1f7   : > { %v3750_v13 = vpop.f32.mrb[23].mxu0  ;;  %v671_v19 = vsel %vm649_vm3, %v3748_v12, -inf }
 0x1f8   : > { %666 = vmax.xlane.f32.xlu1 %v665_v15  ;;  %v668_v22 = vsel %vm649_vm3, %v3750_v13, -inf }
 0x1fc   : > { %672 = vmax.xlane.f32.xlu1 %v671_v19 }
 0x206   : > { %875 = vrot.lane.b32.xlu0 %v3604_v18, %s3459_s4 }
 0x20d   : > { %885 = vrot.lane.b32.xlu1 %v3654_v40, %s3459_s4 }
 0x211   : > { %889 = vrot.lane.b32.xlu1 %v3676_v49, %s3459_s4 }
 0x215   : > { %3150 = vrot.lane.b32.xlu1 %v3149_v37, %s3460_s8  ;;  %v2971_v37 = vpack.c.bf16 %v2711_v34, %v404_v35 }
 0x217   : > { %2972 = vmatprep.subr.bf16.mxu1 %v2971_v37 }
 0x218   : > { %2974 = vmatpush3.bf16.msra.mxu1 %v2971_v37 }
 0x219   : > { %2976 = vmatprep.subr.bf16.mxu1 %v2975_v50 }
 0x21c   : > { %2978 = vmatpush3.bf16.msra.mxu1 %v2975_v50 }
 0x225   : > { %663 = vmax.xlane.f32.xlu0 %v662_v21 }
 0x229   : > { %669 = vmax.xlane.f32.xlu0 %v668_v22 }
 0x23f   : > { %883 = vrot.lane.b32.xlu0 %v3647_v39, %s3459_s4 }
 0x243   : > { %887 = vrot.lane.b32.xlu0 %v3669_v48, %s3459_s4 }
 0x279   : > { %v655_v44 = vpop.xlane.xlu0 %654 }
 0x27a   : > { %v675_v46 = vsub.f32 %v2733_v63, %v655_v44 }
 0x27c   : > { %v684_v52 = vmul.f32 1.442695, %v675_v46 }
 0x27d   : > { %v652_v53 = vpop.xlane.xlu0 %651  ;;  %v661_v54 = vpop.xlane.xlu1 %660 }
 0x27e   : > { %3264 = vpow2.f32 %v684_v52  ;;  %v674_v23 = vsub.f32 %v3733_v0, %v652_v53  ;;  %v677_v14 = vsub.f32 %v3736_v3, %v661_v54 }
 0x280   : > { %v682_v25 = vmul.f32 1.442695, %v674_v23  ;;  %v688_v29 = vmul.f32 1.442695, %v677_v14 }
 0x281   : > { %v876_v62 = vpop.permute.xlu0 %875  ;;  %v658_v1 = vpop.xlane.xlu1 %657 }
 0x282   : > { %v899_v8 = vadd.f32 %v876_v62, %v3599_v17  ;;  %v676_v31 = vsub.f32 %v3738_v5, %v658_v1 }
 0x284   : > { %v3144_v11 = vpack.i.bf16 %v900_v7, %v899_v8  ;;  %v686_v33 = vmul.f32 1.442695, %v676_v31 }
 0x285   : > { %v667_v15 = vpop.xlane.xlu1 %666 }
 0x286   : > { %v679_v19 = vsub.f32 %v2739_v9, %v667_v15  ;;  %3145 = vrot.lane.b32.xlu0 %v3144_v11, %s3460_s8 }
 0x288   : > { %v3785_v63 = vpop.eup %3264  ;;  %v692_v21 = vmul.f32 1.442695, %v679_v19 }
 0x289   : > { %v701_v22 = vsel %vm649_vm3, %v3785_v63, 0.0  ;;  %v673_v41 = vpop.xlane.xlu1 %672 }
 0x28a   : > { %3266 = vpow2.f32 %v692_v21  ;;  %702 = vadd.xlane.f32.xlu1 %v701_v22  ;;  %v681_v22 = vsub.f32 %v3748_v12, %v673_v41 }
 0x28b   : > { %3268 = vpow2.f32 %v682_v25 }
 0x28c   : > { %3270 = vpow2.f32 %v688_v29  ;;  %v696_v23 = vmul.f32 1.442695, %v681_v22 }
 0x28d   : > { %3272 = vpow2.f32 %v686_v33  ;;  %v886_v50 = vpop.permute.xlu1 %885 }
 0x28e   : > { %v904_v54 = vadd.f32 %v886_v50, %v3656_v42 }
 0x291   : > { %v890_v1 = vpop.permute.xlu1 %889 }
 0x292   : > { %v906_v11 = vadd.f32 %v890_v1, %v3678_v51 }
 0x294   : > { %v3791_v28 = vpop.eup %3266 }
 0x295   : > { %v713_v9 = vsel %vm649_vm3, %v3791_v28, 0.0  ;;  %v3796_v34 = vpop.eup %3268 }
 0x296   : > { %714 = vadd.xlane.f32.xlu1 %v713_v9  ;;  %v698_v0 = vsel %vm649_vm3, %v3796_v34, 0.0  ;;  %v3800_v35 = vpop.eup %3270 }
 0x297   : > { %v707_v3 = vsel %vm649_vm3, %v3800_v35, 0.0  ;;  %v3804_v37 = vpop.eup %3272 }
 0x298   : > { %v704_v5 = vsel %vm649_vm3, %v3804_v37, 0.0 }
 0x2a5   : > { %699 = vadd.xlane.f32.xlu0 %v698_v0 }
 0x2a9   : > { %708 = vadd.xlane.f32.xlu0 %v707_v3 }
 0x2ad   : > { %705 = vadd.xlane.f32.xlu0 %v704_v5  ;;  %v3151_v5 = vpop.permute.xlu1 %3150 }
 0x2b2   : > { %v664_v43 = vpop.xlane.xlu0 %663 }
 0x2b3   : > { %v678_v44 = vsub.f32 %v3744_v10, %v664_v43 }
 0x2b5   : > { %v690_v46 = vmul.f32 1.442695, %v678_v44 }
 0x2b6   : > { %v670_v52 = vpop.xlane.xlu0 %669 }
 0x2b7   : > { %3274 = vpow2.f32 %v690_v46  ;;  %v680_v25 = vsub.f32 %v3750_v13, %v670_v52 }
 0x2b8   : > { %3276 = vpow2.f32 %v696_v23 }
 0x2b9   : > { %v694_v14 = vmul.f32 1.442695, %v680_v25 }
 0x2ba   : > { %v884_v53 = vpop.permute.xlu0 %883 }
 0x2bb   : > { %v903_v62 = vadd.f32 %v884_v53, %v3640_v38  ;;  %3278 = vpow2.f32 %v694_v14  ;;  %v3153_v53 = vunpack.i.h.bf16 %v3151_v5 }
 0x2bd   : > { %v3154_v7 = vpack.i.bf16 %v904_v54, %v903_v62  ;;  %v3152_v54 = vunpack.i.l.bf16 %v3151_v5 }
 0x2be   : > { %v888_v8 = vpop.permute.xlu0 %887 }
 0x2bf   : > { %v905_v15 = vadd.f32 %v888_v8, %v3662_v47 }
 0x2c1   : > { %v3813_v19 = vpop.eup %3274  ;;  %v3159_v21 = vpack.i.bf16 %v906_v11, %v905_v15 }
 0x2c2   : > { %v710_v10 = vsel %vm649_vm3, %v3813_v19, 0.0  ;;  %v3825_v9 = vpop.eup %3276 }
 0x2c3   : > { %711 = vadd.xlane.f32.xlu0 %v710_v10  ;;  %3160 = vrot.lane.b32.xlu1 %v3159_v21, %s3460_s8  ;;  %v719_v12 = vsel %vm649_vm3, %v3825_v9, 0.0 }
 0x2c5   : > { %v3831_v13 = vpop.eup %3278 }
 0x2c6   : > { %v716_v29 = vsel %vm649_vm3, %v3831_v13, 0.0 }
 0x2d9   : > { %3155 = vrot.lane.b32.xlu0 %v3154_v7, %s3460_s8  ;;  %v2985_v7 = vpack.c.bf16 %v3153_v53, %v3152_v54 }
 0x2dd   : > { %907 = vrot.lane.b32.xlu0 %v3597_v16, %s3460_s8 }
 0x2e1   : > { %911 = vrot.lane.b32.xlu0 %v3690_v56, %s3460_s8 }
 0x2e5   : > { %915 = vrot.lane.b32.xlu0 %v3698_v58, %s3460_s8 }
 0x2e7   : > { %720 = vadd.xlane.f32.xlu1 %v719_v12 }
 0x2e9   : > { %919 = vrot.lane.b32.xlu0 %v3706_v60, %s3460_s8 }
 0x2eb   : > { %717 = vadd.xlane.f32.xlu1 %v716_v29 }
 0x2ed   : > { %1333 = vrot.lane.b32.xlu0 %v3604_v18, %s3461_s9 }
 0x2f1   : > { %1341 = vrot.lane.b32.xlu0 %v3647_v39, %s3461_s9 }
 0x2f8   : > { %v3146_v31 = vpop.permute.xlu0 %3145 }
 0x2f9   : > { %v3148_v33 = vunpack.i.h.bf16 %v3146_v31  ;;  %v3147_v0 = vunpack.i.l.bf16 %v3146_v31 }
 0x2fb   : > { %v2979_v3 = vpack.c.bf16 %v3148_v33, %v3147_v0 }
 0x2fc   : > { %909 = vrot.lane.b32.xlu1 %v3688_v55, %s3460_s8 }
 0x2fd   : > { %2981 = vmatprep.subr.msk.bf16.mxu1 %vm3616_vm2, %v2979_v3 }
 0x300   : > { %913 = vrot.lane.b32.xlu1 %v3696_v57, %s3460_s8 }
 0x304   : > { %917 = vrot.lane.b32.xlu1 %v3704_v59, %s3460_s8 }
 0x308   : > { %921 = vrot.lane.b32.xlu1 %v3712_v61, %s3460_s8 }
 0x30c   : > { %1335 = vrot.lane.b32.xlu1 %v3543_v2, %s3461_s9 }
 0x310   : > { %1337 = vrot.lane.b32.xlu1 %v3551_v4, %s3461_s9 }
 0x314   : > { %1339 = vrot.lane.b32.xlu1 %v3562_v6, %s3461_s9 }
 0x317   : > { %v703_v41 = vpop.xlane.xlu1 %702 }
 0x318   : > { %1343 = vrot.lane.b32.xlu1 %v3654_v40, %s3461_s9  ;;  %3280 = vrcp.f32 %v703_v41 }
 0x322   : > { %v3281_v50 = vpop.eup %3280 }
 0x323   : > { %v731_v1 = vmul.f32 %v3281_v50, %v3785_v63  ;;  %v715_v63 = vpop.xlane.xlu1 %714 }
 0x332   : > { %v700_v43 = vpop.xlane.xlu0 %699 }
 0x333   : > { %3282 = vrcp.f32 %v700_v43 }
 0x335   : > { %v3161_v10 = vpop.permute.xlu1 %3160 }
 0x336   : > { %v709_v44 = vpop.xlane.xlu0 %708  ;;  %v3163_v23 = vunpack.i.h.bf16 %v3161_v10  ;;  %v3162_v25 = vunpack.i.l.bf16 %v3161_v10 }
 0x337   : > { %3284 = vrcp.f32 %v709_v44 }
 0x338   : > { %v2997_v29 = vpack.c.bf16 %v3163_v23, %v3162_v25 }
 0x33a   : > { %v706_v46 = vpop.xlane.xlu0 %705 }
 0x33b   : > { %3286 = vrcp.f32 %v706_v46 }
 0x33c   : > { %3288 = vrcp.f32 %v715_v63 }
 0x33d   : > { %v3283_v52 = vpop.eup %3282 }
 0x33e   : > { %v730_v62 = vmul.f32 %v3283_v52, %v3796_v34 }
 0x340   : > { %2759 = vmatprep.mubr.msk.f32.mxu1 %vm649_vm3, %v730_v62 }
 0x341   : > { %2760 = vmatmul.mubr.msk.f32.vlgmr.msra.gmra.mrb[8].mxu1 %vm649_vm3, %v731_v1  ;;  %v3285_v8 = vpop.eup %3284 }
 0x342   : > { %2984 = vmatpush3.bf16.xpose.msk.msra.mxu1 %vm3616_vm2, %v2979_v3  ;;  %v733_v21 = vmul.f32 %v3285_v8, %v3800_v35 }
 0x343   : > { %2987 = vmatprep.subr.msk.bf16.mxu1 %vm3616_vm2, %v2985_v7 }
 0x345   : > { %v3287_v11 = vpop.eup %3286 }
 0x346   : > { %v732_v15 = vmul.f32 %v3287_v11, %v3804_v37  ;;  %v3289_v35 = vpop.eup %3288 }
 0x347   : > { %v735_v0 = vmul.f32 %v3289_v35, %v3791_v28 }
 0x348   : > { %2762 = vmatprep.mubr.msk.f32.mxu1 %vm649_vm3, %v732_v15 }
 0x349   : > { %2763 = vmatmul.mubr.msk.f32.gmra.mrb[10].mxu1 %vm649_vm3, %v733_v21 }
 0x34a   : > { %2990 = vmatpush3.bf16.xpose.msk.msra.mxu1 %vm3616_vm2, %v2985_v7 }
 0x350   : > { %v712_v34 = vpop.xlane.xlu0 %711 }
 0x351   : > { %3290 = vrcp.f32 %v712_v34 }
 0x354   : > { %v3156_v22 = vpop.permute.xlu0 %3155 }
 0x355   : > { %v3158_v14 = vunpack.i.h.bf16 %v3156_v22  ;;  %v3157_v12 = vunpack.i.l.bf16 %v3156_v22 }
 0x357   : > { %v2991_v37 = vpack.c.bf16 %v3158_v14, %v3157_v12 }
 0x358   : > { %v908_v3 = vpop.permute.xlu0 %907 }
 0x359   : > { %2993 = vmatprep.subr.msk.bf16.mxu1 %vm3616_vm2, %v2991_v37 }
 0x35a   : > { %2996 = vmatpush3.bf16.xpose.msk.msra.mxu1 %vm3616_vm2, %v2991_v37 }
 0x35b   : > { %v3291_v31 = vpop.eup %3290  ;;  %2999 = vmatprep.subr.msk.bf16.mxu1 %vm3616_vm2, %v2997_v29 }
 0x35c   : > { %v734_v33 = vmul.f32 %v3291_v31, %v3813_v19  ;;  %v912_v41 = vpop.permute.xlu0 %911 }
 0x35e   : > { %2765 = vmatprep.mubr.msk.f32.mxu1 %vm649_vm3, %v734_v33 }
 0x35f   : > { %2766 = vmatmul.mubr.msk.f32.gmra.mrb[12].mxu1 %vm649_vm3, %v735_v0 }
 0x360   : > { %v916_v46 = vpop.permute.xlu0 %915 }
 0x362   : > { %3002 = vmatpush3.bf16.xpose.msk.msra.mxu1 %vm3616_vm2, %v2997_v29 }
 0x364   : > { %v920_v53 = vpop.permute.xlu0 %919 }
 0x368   : > { %v1334_v7 = vpop.permute.xlu0 %1333 }
 0x369   : > { %v1357_v11 = vadd.f32 %v1334_v7, %v3599_v17 }
 0x36c   : > { %v1342_v10 = vpop.permute.xlu0 %1341 }
 0x36d   : > { %v3902_v25 = vadd.f32 %v1342_v10, %v3640_v38 }
 0x374   : > { %v721_v5 = vpop.xlane.xlu1 %720 }
 0x375   : > { %3292 = vrcp.f32 %v721_v5 }
 0x378   : > { %v718_v43 = vpop.xlane.xlu1 %717 }
 0x379   : > { %3294 = vrcp.f32 %v718_v43 }
 0x37c   : > { %v910_v44 = vpop.permute.xlu1 %909 }
 0x37f   : > { %v3293_v52 = vpop.eup %3292 }
 0x380   : > { %v914_v50 = vpop.permute.xlu1 %913  ;;  %v737_v62 = vmul.f32 %v3293_v52, %v3825_v9 }
 0x383   : > { %v3295_v19 = vpop.eup %3294 }
 0x384   : > { %v918_v28 = vpop.permute.xlu1 %917  ;;  %v736_v54 = vmul.f32 %v3295_v19, %v3831_v13 }
 0x386   : > { %2768 = vmatprep.mubr.msk.f32.mxu1 %vm649_vm3, %v736_v54 }
 0x387   : > { %2769 = vmatmul.mubr.msk.f32.gmra.mrb[14].mxu1 %vm649_vm3, %v737_v62 }
 0x388   : > { %v922_v1 = vpop.permute.xlu1 %921  ;;  %2787 = vmatprep.mubr.msk.f32.mxu1 %vm495_vm1, %v908_v3 }
 0x38b   : > { %2788 = vmatmul.mubr.msk.f32.vlgmr.msra.gmra.mrb[16].mxu1 %vm495_vm1, %v910_v44 }
 0x38c   : > { %v1336_v8 = vpop.permute.xlu1 %1335  ;;  %2790 = vmatprep.mubr.msk.f32.mxu1 %vm495_vm1, %v912_v41 }
 0x38d   : > { %v1358_v15 = vadd.f32 %v1336_v8, %v3608_v20 }
 0x38f   : > { %v3184_v13 = vpack.i.bf16 %v1358_v15, %v1357_v11  ;;  %2791 = vmatmul.mubr.msk.f32.gmra.mrb[18].mxu1 %vm495_vm1, %v914_v50 }
 0x390   : > { %v1338_v9 = vpop.permute.xlu1 %1337  ;;  %2793 = vmatprep.mubr.msk.f32.mxu1 %vm495_vm1, %v916_v46 }
 0x391   : > { %v1359_v63 = vadd.f32 %v1338_v9, %v3620_v27 }
 0x393   : > { %2794 = vmatmul.mubr.msk.f32.gmra.mrb[20].mxu1 %vm495_vm1, %v918_v28 }
 0x394   : > { %v1340_v21 = vpop.permute.xlu1 %1339  ;;  %2796 = vmatprep.mubr.msk.f32.mxu1 %vm495_vm1, %v920_v53 }
 0x395   : > { %v1360_v34 = vadd.f32 %v1340_v21, %v3626_v30 }
 0x397   : > { %v3189_v22 = vpack.i.bf16 %v1360_v34, %v1359_v63  ;;  %2797 = vmatmul.mubr.msk.f32.gmra.mrb[22].mxu1 %vm495_vm1, %v922_v1 }
 0x398   : > { %v1344_v23 = vpop.permute.xlu1 %1343 }
 0x399   : > { %v3905_v14 = vadd.f32 %v1344_v23, %v3656_v42 }
 0x414   : > { %v3909_v37 = vpop.f32.mrb[8].mxu1 }
 0x415   : > { %v3911_v29 = vpop.f32.mrb[9].mxu1 }
 0x41c   : > { %v3913_v35 = vpop.f32.mrb[10].mxu1 }
 0x41d   : > { %v3915_v31 = vpop.f32.mrb[11].mxu1 }
 0x432   : > { %v3917_v33 = vpop.f32.mrb[12].mxu1 }
 0x433   : > { %v3919_v0 = vpop.f32.mrb[13].mxu1 }
 0x45a   : > { %v3921_v3 = vpop.f32.mrb[14].mxu1 }
 0x45b   : > { %v3923_v5 = vpop.f32.mrb[15].mxu1 }
 0x45e   : > { %v2789_v41 = vpop.f32.mrb[16].mxu1 }
 0x45f   : > { %v1045_v43 = vpop.f32.mrb[17].mxu1  ;;  %v1087_v44 = vsel %vm649_vm3, %v2789_v41, -inf }
 0x460   : > { %1088 = vmax.xlane.f32.xlu1 %v1087_v44  ;;  %v1084_v46 = vsel %vm649_vm3, %v1045_v43, -inf }
 0x461   : > { %1085 = vmax.xlane.f32.xlu0 %v1084_v46 }
 0x462   : > { %v2792_v50 = vpop.f32.mrb[18].mxu1 }
 0x463   : > { %v1055_v52 = vpop.f32.mrb[19].mxu1  ;;  %v1093_v1 = vsel %vm649_vm3, %v2792_v50, -inf }
 0x464   : > { %v1090_v8 = vsel %vm649_vm3, %v1055_v52, -inf }
 0x466   : > { %v2795_v19 = vpop.f32.mrb[20].mxu1 }
 0x467   : > { %v1065_v53 = vpop.f32.mrb[21].mxu1  ;;  %v1099_v62 = vsel %vm649_vm3, %v2795_v19, -inf }
 0x468   : > { %v1096_v11 = vsel %vm649_vm3, %v1065_v53, -inf }
 0x46a   : > { %v3927_v28 = vpop.f32.mrb[22].mxu1 }
 0x46b   : > { %v3929_v54 = vpop.f32.mrb[23].mxu1  ;;  %v1105_v7 = vsel %vm649_vm3, %v3927_v28, -inf }
 0x471   : > { %1347 = vrot.lane.b32.xlu1 %v3676_v49, %s3461_s9  ;;  %v1102_v49 = vsel %vm649_vm3, %v3929_v54, -inf }
 0x477   : > { %1345 = vrot.lane.b32.xlu0 %v3669_v48, %s3461_s9 }
 0x495   : > { %1100 = vmax.xlane.f32.xlu1 %v1099_v62 }
 0x496   : > { %1094 = vmax.xlane.f32.xlu0 %v1093_v1 }
 0x499   : > { %1106 = vmax.xlane.f32.xlu1 %v1105_v7 }
 0x49a   : > { %1091 = vmax.xlane.f32.xlu0 %v1090_v8 }
 0x49e   : > { %1097 = vmax.xlane.f32.xlu0 %v1096_v11 }
 0x4a2   : > { %1103 = vmax.xlane.f32.xlu0 %v1102_v49 }
 0x4aa   : > { %3170 = vrot.lane.b32.xlu1 %v3775_v32, %s3460_s8 }
 0x4ae   : > { %3180 = vrot.lane.b32.xlu1 %v3779_v45, %s3460_s8 }
 0x4b2   : > { %3190 = vrot.lane.b32.xlu1 %v3189_v22, %s3461_s9 }
 0x4b8   : > { %3165 = vrot.lane.b32.xlu0 %v3773_v26, %s3460_s8 }
 0x4bc   : > { %3175 = vrot.lane.b32.xlu0 %v3777_v36, %s3460_s8 }
 0x4c0   : > { %3185 = vrot.lane.b32.xlu0 %v3184_v13, %s3461_s9 }
 0x4ed   : > { %v1089_v48 = vpop.xlane.xlu1 %1088 }
 0x4ee   : > { %v1109_v15 = vsub.f32 %v2789_v41, %v1089_v48  ;;  %v1086_v9 = vpop.xlane.xlu0 %1085 }
 0x4ef   : > { %v1108_v21 = vsub.f32 %v1045_v43, %v1086_v9 }
 0x4f0   : > { %v1118_v63 = vmul.f32 1.442695, %v1109_v15 }
 0x4f1   : > { %v1116_v34 = vmul.f32 1.442695, %v1108_v21  ;;  %v1348_v10 = vpop.permute.xlu1 %1347 }
 0x4f2   : > { %3296 = vpow2.f32 %v1118_v63  ;;  %v3954_v23 = vadd.f32 %v1348_v10, %v3678_v51  ;;  %v1346_v22 = vpop.permute.xlu0 %1345 }
 0x4f3   : > { %3298 = vpow2.f32 %v1116_v34  ;;  %v3957_v44 = vadd.f32 %v1346_v22, %v3662_v47 }
 0x4fc   : > { %v3961_v13 = vpop.eup %3296 }
 0x4fd   : > { %v3963_v41 = vpop.eup %3298  ;;  %v1135_v43 = vsel %vm649_vm3, %v3961_v13, 0.0 }
 0x4fe   : > { %1136 = vadd.xlane.f32.xlu1 %v1135_v43  ;;  %v1132_v62 = vsel %vm649_vm3, %v3963_v41, 0.0 }
 0x4ff   : > { %1133 = vadd.xlane.f32.xlu0 %v1132_v62 }
 0x522   : > { %v1101_v1 = vpop.xlane.xlu1 %1100 }
 0x523   : > { %v1095_v7 = vpop.xlane.xlu0 %1094  ;;  %v1113_v11 = vsub.f32 %v2795_v19, %v1101_v1 }
 0x524   : > { %v1111_v8 = vsub.f32 %v2792_v50, %v1095_v7 }
 0x525   : > { %v1126_v9 = vmul.f32 1.442695, %v1113_v11 }
 0x526   : > { %v1122_v49 = vmul.f32 1.442695, %v1111_v8  ;;  %v1107_v63 = vpop.xlane.xlu1 %1106 }
 0x527   : > { %v1092_v48 = vpop.xlane.xlu0 %1091 }
 0x528   : > { %3300 = vpow2.f32 %v1122_v49  ;;  %v1110_v15 = vsub.f32 %v1055_v52, %v1092_v48 }
 0x52a   : > { %v1120_v21 = vmul.f32 1.442695, %v1110_v15  ;;  %v3171_v12 = vpop.permute.xlu1 %3170 }
 0x52b   : > { %v1098_v34 = vpop.xlane.xlu0 %1097  ;;  %v3173_v19 = vunpack.i.h.bf16 %v3171_v12  ;;  %v3172_v1 = vunpack.i.l.bf16 %v3171_v12 }
 0x52c   : > { %3302 = vpow2.f32 %v1120_v21  ;;  %v1112_v10 = vsub.f32 %v1065_v53, %v1098_v34 }
 0x52d   : > { %3304 = vpow2.f32 %v1126_v9  ;;  %v3007_v21 = vpack.c.bf16 %v3173_v19, %v3172_v1 }
 0x52e   : > { %v1124_v22 = vmul.f32 1.442695, %v1112_v10  ;;  %v3181_v34 = vpop.permute.xlu1 %3180 }
 0x52f   : > { %v1104_v43 = vpop.xlane.xlu0 %1103 }
 0x530   : > { %3306 = vpow2.f32 %v1124_v22  ;;  %v3183_v22 = vunpack.i.h.bf16 %v3181_v34 }
 0x532   : > { %v3969_v46 = vpop.eup %3300 }
 0x533   : > { %v3166_v62 = vpop.permute.xlu0 %3165  ;;  %v1141_v50 = vsel %vm649_vm3, %v3969_v46, 0.0 }
 0x534   : > { %v3168_v52 = vunpack.i.h.bf16 %v3166_v62  ;;  %v3167_v7 = vunpack.i.l.bf16 %v3166_v62  ;;  %1142 = vadd.xlane.f32.xlu1 %v1141_v50  ;;  %v3182_v62 = vunpack.i.l.bf16 %v3181_v34  ;;  %v1114_v34 = vsub.f32 %v3929_v54, %v1104_v43 }
 0x536   : > { %v3973_v8 = vpop.eup %3302  ;;  %v3003_v11 = vpack.c.bf16 %v3168_v52, %v3167_v7  ;;  %v3015_v1 = vpack.c.bf16 %v3183_v22, %v3182_v62 }
 0x537   : > { %v3176_v53 = vpop.permute.xlu0 %3175  ;;  %v1138_v49 = vsel %vm649_vm3, %v3973_v8, 0.0  ;;  %v3977_v48 = vpop.eup %3304 }
 0x538   : > { %v3178_v15 = vunpack.i.h.bf16 %v3176_v53  ;;  %v3177_v9 = vunpack.i.l.bf16 %v3176_v53  ;;  %1139 = vadd.xlane.f32.xlu0 %v1138_v49  ;;  %3004 = vmatprep.subr.bf16.mxu0 %v3003_v11  ;;  %v1147_v12 = vsel %vm649_vm3, %v3977_v48, 0.0  ;;  %v4462_v49 = vpack.i.bf16 %v3954_v23, %v3957_v44  ;;  %v3191_v44 = vpop.permute.xlu1 %3190 }
 0x539   : > { %3006 = vmatpush3.bf16.msra.mxu0 %v3003_v11  ;;  %v1128_v23 = vmul.f32 1.442695, %v1114_v34  ;;  %v3192_v22 = vunpack.i.l.bf16 %v3191_v44 }
 0x53a   : > { %3008 = vmatprep.subr.bf16.mxu0 %v3007_v21  ;;  %v3981_v10 = vpop.eup %3306  ;;  %v3011_v50 = vpack.c.bf16 %v3178_v15, %v3177_v9  ;;  %v1115_v15 = vsub.f32 %v3927_v28, %v1107_v63  ;;  %v4463_v9 = vpack.i.bf16 %v3905_v14, %v3902_v25 }
 0x53b   : > { %v3186_v52 = vpop.permute.xlu0 %3185  ;;  %v1144_v7 = vsel %vm649_vm3, %v3981_v10, 0.0 }
 0x53c   : > { %1148 = vadd.xlane.f32.xlu0 %v1147_v12  ;;  %v3188_v53 = vunpack.i.h.bf16 %v3186_v52  ;;  %v3187_v19 = vunpack.i.l.bf16 %v3186_v52  ;;  %v3193_v12 = vunpack.i.h.bf16 %v3191_v44 }
 0x53d   : > { %3010 = vmatpush3.bf16.msra.mxu0 %v3007_v21  ;;  %v1130_v21 = vmul.f32 1.442695, %v1115_v15 }
 0x53e   : > { %3012 = vmatprep.subr.bf16.mxu0 %v3011_v50  ;;  %v3019_v11 = vpack.c.bf16 %v3188_v53, %v3187_v19 }
 0x53f   : > { %3308 = vpow2.f32 %v1130_v21 }
 0x540   : > { %1145 = vadd.xlane.f32.xlu0 %v1144_v7  ;;  %3310 = vpow2.f32 %v1128_v23 }
 0x541   : > { %3014 = vmatpush3.bf16.msra.mxu0 %v3011_v50 }
 0x542   : > { %3016 = vmatprep.subr.bf16.mxu0 %v3015_v1 }
 0x545   : > { %3200 = vrot.lane.b32.xlu1 %v4462_v49, %s3461_s9  ;;  %3018 = vmatpush3.bf16.msra.mxu0 %v3015_v1 }
 0x546   : > { %3021 = vmatprep.subr.msk.bf16.mxu0 %vm3616_vm2, %v3019_v11 }
 0x549   : > { %v4003_v28 = vpop.eup %3308 }
 0x54a   : > { %v1153_v25 = vsel %vm649_vm3, %v4003_v28, 0.0  ;;  %v4009_v14 = vpop.eup %3310 }
 0x54b   : > { %v1150_v54 = vsel %vm649_vm3, %v4009_v14, 0.0 }
 0x556   : > { %3195 = vrot.lane.b32.xlu0 %v4463_v9, %s3461_s9 }
 0x55a   : > { %1365 = vrot.lane.b32.xlu0 %v3597_v16, %s3461_s9 }
 0x55e   : > { %1369 = vrot.lane.b32.xlu0 %v3690_v56, %s3461_s9 }
 0x562   : > { %1373 = vrot.lane.b32.xlu0 %v3698_v58, %s3461_s9 }
 0x566   : > { %1377 = vrot.lane.b32.xlu0 %v3706_v60, %s3461_s9 }
 0x569   : > { %1154 = vadd.xlane.f32.xlu1 %v1153_v25 }
 0x56a   : > { %1783 = vrot.lane.b32.xlu0 %v3604_v18, %s3460_s8 }
 0x56d   : > { %1151 = vadd.xlane.f32.xlu1 %v1150_v54 }
 0x56e   : > { %1791 = vrot.lane.b32.xlu0 %v3647_v39, %s3460_s8 }
 0x57e   : > { %1367 = vrot.lane.b32.xlu1 %v3688_v55, %s3461_s9 }
 0x582   : > { %1371 = vrot.lane.b32.xlu1 %v3696_v57, %s3461_s9 }
 0x586   : > { %1375 = vrot.lane.b32.xlu1 %v3704_v59, %s3461_s9 }
 0x58a   : > { %1379 = vrot.lane.b32.xlu1 %v3712_v61, %s3461_s9 }
 0x58b   : > { %v1137_v18 = vpop.xlane.xlu1 %1136 }
 0x58c   : > { %3312 = vrcp.f32 %v1137_v18  ;;  %v1134_v63 = vpop.xlane.xlu0 %1133 }
 0x58d   : > { %3314 = vrcp.f32 %v1134_v63 }
 0x58e   : > { %1785 = vrot.lane.b32.xlu1 %v3543_v2, %s3460_s8  ;;  %v3025_v2 = vpack.c.bf16 %v3193_v12, %v3192_v22 }
 0x592   : > { %1787 = vrot.lane.b32.xlu1 %v3551_v4, %s3460_s8 }
 0x596   : > { %v3313_v39 = vpop.eup %3312  ;;  %1789 = vrot.lane.b32.xlu1 %v3562_v6, %s3460_s8 }
 0x597   : > { %v3315_v43 = vpop.eup %3314  ;;  %v1165_v50 = vmul.f32 %v3313_v39, %v3961_v13 }
 0x598   : > { %v1164_v62 = vmul.f32 %v3315_v43, %v3963_v41 }
 0x59a   : > { %2815 = vmatprep.mubr.msk.f32.mxu0 %vm649_vm3, %v1164_v62  ;;  %1793 = vrot.lane.b32.xlu1 %v3654_v40, %s3460_s8 }
 0x59b   : > { %2816 = vmatmul.mubr.msk.f32.vlgmr.msra.gmra.mrb[24].mxu0 %vm649_vm3, %v1165_v50 }
 0x59c   : > { %3024 = vmatpush3.bf16.xpose.msk.msra.mxu0 %vm3616_vm2, %v3019_v11 }
 0x59d   : > { %3027 = vmatprep.subr.msk.bf16.mxu0 %vm3616_vm2, %v3025_v2 }
 0x5a4   : > { %3030 = vmatpush3.bf16.xpose.msk.msra.mxu0 %vm3616_vm2, %v3025_v2 }
 0x5c1   : > { %v1143_v4 = vpop.xlane.xlu1 %1142 }
 0x5c2   : > { %3316 = vrcp.f32 %v1143_v4 }
 0x5c5   : > { %v1140_v6 = vpop.xlane.xlu0 %1139  ;;  %v3201_v40 = vpop.permute.xlu1 %3200 }
 0x5c6   : > { %3318 = vrcp.f32 %v1140_v6  ;;  %v3203_v53 = vunpack.i.h.bf16 %v3201_v40  ;;  %v3202_v11 = vunpack.i.l.bf16 %v3201_v40 }
 0x5c8   : > { %v3037_v34 = vpack.c.bf16 %v3203_v53, %v3202_v11 }
 0x5c9   : > { %v1149_v13 = vpop.xlane.xlu0 %1148 }
 0x5ca   : > { %3320 = vrcp.f32 %v1149_v13 }
 0x5cc   : > { %v3317_v52 = vpop.eup %3316 }
 0x5cd   : > { %v1146_v41 = vpop.xlane.xlu0 %1145  ;;  %v1167_v9 = vmul.f32 %v3317_v52, %v3969_v46 }
 0x5ce   : > { %3322 = vrcp.f32 %v1146_v41 }
 0x5d0   : > { %v3319_v7 = vpop.eup %3318 }
 0x5d1   : > { %v3196_v19 = vpop.permute.xlu0 %3195  ;;  %v1166_v1 = vmul.f32 %v3319_v7, %v3973_v8 }
 0x5d2   : > { %v3198_v49 = vunpack.i.h.bf16 %v3196_v19  ;;  %v3197_v15 = vunpack.i.l.bf16 %v3196_v19 }
 0x5d3   : > { %2818 = vmatprep.mubr.msk.f32.mxu0 %vm649_vm3, %v1166_v1 }
 0x5d4   : > { %v3031_v21 = vpack.c.bf16 %v3198_v49, %v3197_v15  ;;  %2819 = vmatmul.mubr.msk.f32.gmra.mrb[26].mxu0 %vm649_vm3, %v1167_v9  ;;  %v3321_v23 = vpop.eup %3320 }
 0x5d5   : > { %v1169_v46 = vmul.f32 %v3321_v23, %v3977_v48  ;;  %v1366_v54 = vpop.permute.xlu0 %1365 }
 0x5d6   : > { %3033 = vmatprep.subr.msk.bf16.mxu0 %vm3616_vm2, %v3031_v21 }
 0x5d7   : > { %3036 = vmatpush3.bf16.xpose.msk.msra.mxu0 %vm3616_vm2, %v3031_v21 }
 0x5d8   : > { %v3323_v25 = vpop.eup %3322  ;;  %3039 = vmatprep.subr.msk.bf16.mxu0 %vm3616_vm2, %v3037_v34 }
 0x5d9   : > { %v1168_v8 = vmul.f32 %v3323_v25, %v3981_v10  ;;  %v1370_v18 = vpop.permute.xlu0 %1369 }
 0x5db   : > { %2821 = vmatprep.mubr.msk.f32.mxu0 %vm649_vm3, %v1168_v8 }
 0x5dc   : > { %2822 = vmatmul.mubr.msk.f32.gmra.mrb[28].mxu0 %vm649_vm3, %v1169_v46 }
 0x5dd   : > { %v1374_v43 = vpop.permute.xlu0 %1373 }
 0x5df   : > { %3042 = vmatpush3.bf16.xpose.msk.msra.mxu0 %vm3616_vm2, %v3037_v34 }
 0x5e1   : > { %v1378_v62 = vpop.permute.xlu0 %1377 }
 0x5e5   : > { %v1784_v6 = vpop.permute.xlu0 %1783 }
 0x5e6   : > { %v1807_v41 = vadd.f32 %v1784_v6, %v3599_v17 }
 0x5e9   : > { %v1792_v19 = vpop.permute.xlu0 %1791 }
 0x5f6   : > { %v1155_v44 = vpop.xlane.xlu1 %1154 }
 0x5f7   : > { %3324 = vrcp.f32 %v1155_v44 }
 0x5fa   : > { %v1152_v63 = vpop.xlane.xlu1 %1151 }
 0x5fb   : > { %3326 = vrcp.f32 %v1152_v63 }
 0x5fe   : > { %v1368_v39 = vpop.permute.xlu1 %1367 }
 0x601   : > { %v3325_v22 = vpop.eup %3324 }
 0x602   : > { %v1372_v12 = vpop.permute.xlu1 %1371  ;;  %v1171_v2 = vmul.f32 %v3325_v22, %v4003_v28  ;;  %v3393_v22 = vld [vmem:[%s4456_s2 + $0x30] sm:$0xff] }
 0x605   : > { %v3327_v10 = vpop.eup %3326 }
 0x606   : > { %v1376_v48 = vpop.permute.xlu1 %1375  ;;  %v1170_v50 = vmul.f32 %v3327_v10, %v4009_v14 }
 0x608   : > { %2824 = vmatprep.mubr.msk.f32.mxu0 %vm649_vm3, %v1170_v50 }
 0x609   : > { %2825 = vmatmul.mubr.msk.f32.gmra.mrb[30].mxu0 %vm649_vm3, %v1171_v2 }
 0x60a   : > { %v1380_v4 = vpop.permute.xlu1 %1379  ;;  %2843 = vmatprep.mubr.msk.f32.mxu0 %vm495_vm1, %v1366_v54 }
 0x60d   : > { %2844 = vmatmul.mubr.msk.f32.vlgmr.msra.gmra.mrb[32].mxu0 %vm495_vm1, %v1368_v39 }
 0x60e   : > { %v1786_v13 = vpop.permute.xlu1 %1785  ;;  %2846 = vmatprep.mubr.msk.f32.mxu0 %vm495_vm1, %v1370_v18 }
 0x60f   : > { %v1808_v40 = vadd.f32 %v1786_v13, %v3608_v20  ;;  %v4076_v20 = vadd.f32 %v1792_v19, %v3640_v38 }
 0x611   : > { %v3224_v14 = vpack.i.bf16 %v1808_v40, %v1807_v41  ;;  %2847 = vmatmul.mubr.msk.f32.gmra.mrb[34].mxu0 %vm495_vm1, %v1372_v12  ;;  %v3392_v12 = vld [vmem:[%s4456_s2 + $0x38] sm:$0xff] }
 0x612   : > { %v1788_v28 = vpop.permute.xlu1 %1787  ;;  %2849 = vmatprep.mubr.msk.f32.mxu0 %vm495_vm1, %v1374_v43 }
 0x613   : > { %v1809_v7 = vadd.f32 %v1788_v28, %v3620_v27 }
 0x615   : > { %2850 = vmatmul.mubr.msk.f32.gmra.mrb[36].mxu0 %vm495_vm1, %v1376_v48 }
 0x616   : > { %v1790_v52 = vpop.permute.xlu1 %1789  ;;  %2852 = vmatprep.mubr.msk.f32.mxu0 %vm495_vm1, %v1378_v62 }
 0x617   : > { %v1810_v53 = vadd.f32 %v1790_v52, %v3626_v30 }
 0x619   : > { %v3229_v1 = vpack.i.bf16 %v1810_v53, %v1809_v7  ;;  %2853 = vmatmul.mubr.msk.f32.gmra.mrb[38].mxu0 %vm495_vm1, %v1380_v4 }
 0x61a   : > { %v1794_v17 = vpop.permute.xlu1 %1793 }
 0x61b   : > { %v4079_v11 = vadd.f32 %v1794_v17, %v3656_v42 }
 0x61d   : > { %v3234_v49 = vpack.i.bf16 %v4079_v11, %v4076_v20 }
 0x66e   : > { %v4083_v15 = vpop.f32.mrb[24].mxu0 }
 0x66f   : > { %v4085_v9 = vpop.f32.mrb[25].mxu0 }
 0x6a7   : > { %v4087_v27 = vpop.f32.mrb[26].mxu0 }
 0x6a8   : > { %v4089_v30 = vpop.f32.mrb[27].mxu0 }
 0x6af   : > { %v4091_v21 = vpop.f32.mrb[28].mxu0 }
 0x6b0   : > { %v4093_v34 = vpop.f32.mrb[29].mxu0 }
 0x6dc   : > { %v4095_v38 = vpop.f32.mrb[30].mxu0 }
 0x6dd   : > { %v4097_v23 = vpop.f32.mrb[31].mxu0 }
 0x6e0   : > { %v2845_v42 = vpop.f32.mrb[32].mxu0 }
 0x6e1   : > { %v1503_v25 = vpop.f32.mrb[33].mxu0  ;;  %v1545_v8 = vsel %vm649_vm3, %v2845_v42, -inf }
 0x6e2   : > { %1546 = vmax.xlane.f32.xlu1 %v1545_v8  ;;  %v1542_v46 = vsel %vm649_vm3, %v1503_v25, -inf }
 0x6e3   : > { %1543 = vmax.xlane.f32.xlu0 %v1542_v46 }
 0x6e4   : > { %v2848_v54 = vpop.f32.mrb[34].mxu0 }
 0x6e5   : > { %v1513_v44 = vpop.f32.mrb[35].mxu0  ;;  %v1551_v62 = vsel %vm649_vm3, %v2848_v54, -inf }
 0x6e6   : > { %v1548_v50 = vsel %vm649_vm3, %v1513_v44, -inf }
 0x6e8   : > { %v2851_v18 = vpop.f32.mrb[36].mxu0 }
 0x6e9   : > { %v1523_v63 = vpop.f32.mrb[37].mxu0  ;;  %v1557_v10 = vsel %vm649_vm3, %v2851_v18, -inf }
 0x6ea   : > { %v1554_v2 = vsel %vm649_vm3, %v1523_v63, -inf }
 0x6ec   : > { %v4101_v39 = vpop.f32.mrb[38].mxu0 }
 0x6ed   : > { %v4103_v43 = vpop.f32.mrb[39].mxu0  ;;  %v1563_v48 = vsel %vm649_vm3, %v4101_v39, -inf }
 0x6ee   : > { %v1560_v4 = vsel %vm649_vm3, %v4103_v43, -inf }
 0x6f3   : > { %1797 = vrot.lane.b32.xlu1 %v3392_v12, %s3460_s8 }
 0x6f9   : > { %1795 = vrot.lane.b32.xlu0 %v3393_v22, %s3460_s8 }
 0x717   : > { %1558 = vmax.xlane.f32.xlu1 %v1557_v10 }
 0x718   : > { %1552 = vmax.xlane.f32.xlu0 %v1551_v62 }
 0x71b   : > { %1564 = vmax.xlane.f32.xlu1 %v1563_v48 }
 0x71c   : > { %1549 = vmax.xlane.f32.xlu0 %v1548_v50 }
 0x720   : > { %1555 = vmax.xlane.f32.xlu0 %v1554_v2 }
 0x724   : > { %1561 = vmax.xlane.f32.xlu0 %v1560_v4 }
 0x72c   : > { %3210 = vrot.lane.b32.xlu1 %v3775_v32, %s3461_s9 }
 0x730   : > { %3220 = vrot.lane.b32.xlu1 %v3779_v45, %s3461_s9 }
 0x734   : > { %3230 = vrot.lane.b32.xlu1 %v3229_v1, %s3459_s4 }
 0x73a   : > { %3205 = vrot.lane.b32.xlu0 %v3773_v26, %s3461_s9 }
 0x73e   : > { %3215 = vrot.lane.b32.xlu0 %v3777_v36, %s3461_s9 }
 0x742   : > { %3225 = vrot.lane.b32.xlu0 %v3224_v14, %s3459_s4 }
 0x76f   : > { %v1547_v6 = vpop.xlane.xlu1 %1546 }
 0x770   : > { %v1567_v13 = vsub.f32 %v2845_v42, %v1547_v6  ;;  %v1544_v41 = vpop.xlane.xlu0 %1543 }
 0x771   : > { %v1566_v40 = vsub.f32 %v1503_v25, %v1544_v41 }
 0x772   : > { %v1576_v28 = vmul.f32 1.442695, %v1567_v13 }
 0x773   : > { %v1574_v52 = vmul.f32 1.442695, %v1566_v40  ;;  %v1798_v7 = vpop.permute.xlu1 %1797 }
 0x774   : > { %3328 = vpow2.f32 %v1576_v28  ;;  %v4132_v53 = vadd.f32 %v1798_v7, %v3678_v51  ;;  %v1796_v19 = vpop.permute.xlu0 %1795 }
 0x775   : > { %3330 = vpow2.f32 %v1574_v52  ;;  %v4135_v1 = vadd.f32 %v1796_v19, %v3662_v47 }
 0x777   : > { %v3239_v17 = vpack.i.bf16 %v4132_v53, %v4135_v1 }
 0x77e   : > { %v4139_v14 = vpop.eup %3328 }
 0x77f   : > { %v4141_v42 = vpop.eup %3330  ;;  %v1593_v25 = vsel %vm649_vm3, %v4139_v14, 0.0 }
 0x780   : > { %1594 = vadd.xlane.f32.xlu1 %v1593_v25  ;;  %v1590_v51 = vsel %vm649_vm3, %v4141_v42, 0.0 }
 0x781   : > { %1591 = vadd.xlane.f32.xlu0 %v1590_v51 }
 0x7a4   : > { %v1559_v8 = vpop.xlane.xlu1 %1558 }
 0x7a5   : > { %v1553_v46 = vpop.xlane.xlu0 %1552  ;;  %v1571_v47 = vsub.f32 %v2851_v18, %v1559_v8 }
 0x7a6   : > { %v1569_v12 = vsub.f32 %v2848_v54, %v1553_v46 }
 0x7a7   : > { %v1584_v48 = vmul.f32 1.442695, %v1571_v47 }
 0x7a8   : > { %v1580_v22 = vmul.f32 1.442695, %v1569_v12  ;;  %v1565_v2 = vpop.xlane.xlu1 %1564 }
 0x7a9   : > { %v1550_v10 = vpop.xlane.xlu0 %1549 }
 0x7aa   : > { %3332 = vpow2.f32 %v1580_v22  ;;  %v1568_v62 = vsub.f32 %v1513_v44, %v1550_v10 }
 0x7ac   : > { %v1578_v50 = vmul.f32 1.442695, %v1568_v62  ;;  %v3211_v40 = vpop.permute.xlu1 %3210 }
 0x7ad   : > { %v1556_v4 = vpop.xlane.xlu0 %1555  ;;  %v3213_v18 = vunpack.i.h.bf16 %v3211_v40  ;;  %v3212_v7 = vunpack.i.l.bf16 %v3211_v40 }
 0x7ae   : > { %3334 = vpow2.f32 %v1578_v50  ;;  %v1570_v6 = vsub.f32 %v1523_v63, %v1556_v4 }
 0x7af   : > { %3336 = vpow2.f32 %v1584_v48  ;;  %v3047_v12 = vpack.c.bf16 %v3213_v18, %v3212_v7 }
 0x7b0   : > { %v1582_v13 = vmul.f32 1.442695, %v1570_v6  ;;  %v3221_v10 = vpop.permute.xlu1 %3220 }
 0x7b1   : > { %v1562_v41 = vpop.xlane.xlu0 %1561  ;;  %v3223_v50 = vunpack.i.h.bf16 %v3221_v10  ;;  %v3222_v4 = vunpack.i.l.bf16 %v3221_v10 }
 0x7b2   : > { %3338 = vpow2.f32 %v1582_v13  ;;  %v1572_v53 = vsub.f32 %v4103_v43, %v1562_v41 }
 0x7b4   : > { %v4147_v28 = vpop.eup %3332  ;;  %v1586_v1 = vmul.f32 1.442695, %v1572_v53 }
 0x7b5   : > { %v3206_v52 = vpop.permute.xlu0 %3205  ;;  %v1599_v54 = vsel %vm649_vm3, %v4147_v28, 0.0 }
 0x7b6   : > { %v3208_v44 = vunpack.i.h.bf16 %v3206_v52  ;;  %v3207_v19 = vunpack.i.l.bf16 %v3206_v52  ;;  %1600 = vadd.xlane.f32.xlu1 %v1599_v54  ;;  %v3055_v52 = vpack.c.bf16 %v3223_v50, %v3222_v4 }
 0x7b8   : > { %v4151_v25 = vpop.eup %3334  ;;  %v3043_v51 = vpack.c.bf16 %v3208_v44, %v3207_v19  ;;  %v1573_v44 = vsub.f32 %v4101_v39, %v1565_v2 }
 0x7b9   : > { %v3216_v63 = vpop.permute.xlu0 %3215  ;;  %v1596_v8 = vsel %vm649_vm3, %v4151_v25, 0.0  ;;  %v4155_v46 = vpop.eup %3336 }
 0x7ba   : > { %v3218_v47 = vunpack.i.h.bf16 %v3216_v63  ;;  %v3217_v22 = vunpack.i.l.bf16 %v3216_v63  ;;  %1597 = vadd.xlane.f32.xlu0 %v1596_v8  ;;  %3044 = vmatprep.subr.bf16.mxu1 %v3043_v51  ;;  %v1605_v62 = vsel %vm649_vm3, %v4155_v46, 0.0  ;;  %v1588_v19 = vmul.f32 1.442695, %v1573_v44 }
 0x7bb   : > { %3046 = vmatpush3.bf16.msra.mxu1 %v3043_v51 }
 0x7bc   : > { %3048 = vmatprep.subr.bf16.mxu1 %v3047_v12  ;;  %v4159_v48 = vpop.eup %3338  ;;  %v3051_v6 = vpack.c.bf16 %v3218_v47, %v3217_v22  ;;  %3340 = vpow2.f32 %v1588_v19 }
 0x7bd   : > { %v3226_v13 = vpop.permute.xlu0 %3225  ;;  %v1602_v40 = vsel %vm649_vm3, %v4159_v48, 0.0  ;;  %3342 = vpow2.f32 %v1586_v1 }
 0x7be   : > { %1606 = vadd.xlane.f32.xlu0 %v1605_v62  ;;  %v3228_v54 = vunpack.i.h.bf16 %v3226_v13  ;;  %v3227_v18 = vunpack.i.l.bf16 %v3226_v13 }
 0x7bf   : > { %3050 = vmatpush3.bf16.msra.mxu1 %v3047_v12 }
 0x7c0   : > { %3052 = vmatprep.subr.bf16.mxu1 %v3051_v6  ;;  %v3059_v7 = vpack.c.bf16 %v3228_v54, %v3227_v18 }
 0x7c2   : > { %1603 = vadd.xlane.f32.xlu0 %v1602_v40 }
 0x7c3   : > { %3054 = vmatpush3.bf16.msra.mxu1 %v3051_v6 }
 0x7c4   : > { %3056 = vmatprep.subr.bf16.mxu1 %v3055_v52 }
 0x7c7   : > { %3240 = vrot.lane.b32.xlu1 %v3239_v17, %s3459_s4  ;;  %3058 = vmatpush3.bf16.msra.mxu1 %v3055_v52 }
 0x7c8   : > { %3061 = vmatprep.subr.msk.bf16.mxu1 %vm3616_vm2, %v3059_v7 }
 0x7cb   : > { %1817 = vrot.lane.b32.xlu1 %v3688_v55, %s3459_s4  ;;  %v4185_v55 = vpop.eup %3340 }
 0x7cc   : > { %v4189_v20 = vpop.eup %3342 }
 0x7d8   : > { %3235 = vrot.lane.b32.xlu0 %v3234_v49, %s3459_s4 }
 0x7dc   : > { %1815 = vrot.lane.b32.xlu0 %v3597_v16, %s3459_s4  ;;  %v1611_v16 = vsel %vm649_vm3, %v4185_v55, 0.0 }
 0x7e0   : > { %1819 = vrot.lane.b32.xlu0 %v3690_v56, %s3459_s4  ;;  %v1608_v56 = vsel %vm649_vm3, %v4189_v20, 0.0 }
 0x7e4   : > { %1823 = vrot.lane.b32.xlu0 %v3698_v58, %s3459_s4  ;;  %v3231_v58 = vpop.permute.xlu1 %3230 }
 0x7e5   : > { %v3233_v43 = vunpack.i.h.bf16 %v3231_v58  ;;  %v3232_v17 = vunpack.i.l.bf16 %v3231_v58 }
 0x7e8   : > { %1827 = vrot.lane.b32.xlu0 %v3706_v60, %s3459_s4 }
 0x7ef   : > { %1612 = vadd.xlane.f32.xlu1 %v1611_v16 }
 0x7f3   : > { %1609 = vadd.xlane.f32.xlu1 %v1608_v56 }
 0x804   : > { %1821 = vrot.lane.b32.xlu1 %v3696_v57, %s3459_s4  ;;  %v3065_v57 = vpack.c.bf16 %v3233_v43, %v3232_v17 }
 0x808   : > { %1825 = vrot.lane.b32.xlu1 %v3704_v59, %s3459_s4 }
 0x80c   : > { %1829 = vrot.lane.b32.xlu1 %v3712_v61, %s3459_s4 }
 0x80d   : > { %v1595_v60 = vpop.xlane.xlu1 %1594 }
 0x80e   : > { %3344 = vrcp.f32 %v1595_v60  ;;  %v1592_v11 = vpop.xlane.xlu0 %1591 }
 0x80f   : > { %3346 = vrcp.f32 %v1592_v11 }
 0x818   : > { %v3345_v49 = vpop.eup %3344 }
 0x819   : > { %v3347_v39 = vpop.eup %3346  ;;  %v1623_v41 = vmul.f32 %v3345_v49, %v4139_v14 }
 0x81a   : > { %v1622_v2 = vmul.f32 %v3347_v39, %v4141_v42 }
 0x81c   : > { %2871 = vmatprep.mubr.msk.f32.mxu1 %vm649_vm3, %v1622_v2 }
 0x81d   : > { %2872 = vmatmul.mubr.msk.f32.vlgmr.msra.gmra.mrb[24].mxu1 %vm649_vm3, %v1623_v41 }
 0x81e   : > { %3064 = vmatpush3.bf16.xpose.msk.msra.mxu1 %vm3616_vm2, %v3059_v7 }
 0x81f   : > { %3067 = vmatprep.subr.msk.bf16.mxu1 %vm3616_vm2, %v3065_v57 }
 0x826   : > { %3070 = vmatpush3.bf16.xpose.msk.msra.mxu1 %vm3616_vm2, %v3065_v57 }
 0x843   : > { %v1601_v59 = vpop.xlane.xlu1 %1600 }
 0x844   : > { %3348 = vrcp.f32 %v1601_v59 }
 0x847   : > { %v1598_v61 = vpop.xlane.xlu0 %1597  ;;  %v3241_v51 = vpop.permute.xlu1 %3240 }
 0x848   : > { %3350 = vrcp.f32 %v1598_v61  ;;  %v3243_v12 = vunpack.i.h.bf16 %v3241_v51  ;;  %v3242_v10 = vunpack.i.l.bf16 %v3241_v51 }
 0x84a   : > { %v3077_v13 = vpack.c.bf16 %v3243_v12, %v3242_v10 }
 0x84b   : > { %v1607_v42 = vpop.xlane.xlu0 %1606  ;;  %v1818_v54 = vpop.permute.xlu1 %1817 }
 0x84c   : > { %3352 = vrcp.f32 %v1607_v42 }
 0x84e   : > { %v3349_v63 = vpop.eup %3348 }
 0x84f   : > { %v1604_v14 = vpop.xlane.xlu0 %1603  ;;  %v1625_v4 = vmul.f32 %v3349_v63, %v4147_v28 }
 0x850   : > { %3354 = vrcp.f32 %v1604_v14 }
 0x852   : > { %v3351_v8 = vpop.eup %3350 }
 0x853   : > { %v3236_v47 = vpop.permute.xlu0 %3235  ;;  %v1624_v22 = vmul.f32 %v3351_v8, %v4151_v25 }
 0x854   : > { %v3238_v62 = vunpack.i.h.bf16 %v3236_v47  ;;  %v3237_v50 = vunpack.i.l.bf16 %v3236_v47 }
 0x855   : > { %2874 = vmatprep.mubr.msk.f32.mxu1 %vm649_vm3, %v1624_v22 }
 0x856   : > { %v3071_v6 = vpack.c.bf16 %v3238_v62, %v3237_v50  ;;  %2875 = vmatmul.mubr.msk.f32.gmra.mrb[26].mxu1 %vm649_vm3, %v1625_v4  ;;  %v3353_v40 = vpop.eup %3352 }
 0x857   : > { %v1627_v28 = vmul.f32 %v3353_v40, %v4155_v46  ;;  %v1816_v44 = vpop.permute.xlu0 %1815 }
 0x858   : > { %3073 = vmatprep.subr.msk.bf16.mxu1 %vm3616_vm2, %v3071_v6 }
 0x859   : > { %3076 = vmatpush3.bf16.xpose.msk.msra.mxu1 %vm3616_vm2, %v3071_v6 }
 0x85a   : > { %v3355_v52 = vpop.eup %3354  ;;  %3079 = vmatprep.subr.msk.bf16.mxu1 %vm3616_vm2, %v3077_v13 }
 0x85b   : > { %v1626_v25 = vmul.f32 %v3355_v52, %v4159_v48  ;;  %v1820_v46 = vpop.permute.xlu0 %1819 }
 0x85d   : > { %2877 = vmatprep.mubr.msk.f32.mxu1 %vm649_vm3, %v1626_v25 }
 0x85e   : > { %2878 = vmatmul.mubr.msk.f32.gmra.mrb[28].mxu1 %vm649_vm3, %v1627_v28 }
 0x85f   : > { %v1824_v16 = vpop.permute.xlu0 %1823 }
 0x861   : > { %3082 = vmatpush3.bf16.xpose.msk.msra.mxu1 %vm3616_vm2, %v3077_v13 }
 0x87c   : > { %v1613_v18 = vpop.xlane.xlu1 %1612 }
 0x87d   : > { %3356 = vrcp.f32 %v1613_v18 }
 0x880   : > { %v1610_v7 = vpop.xlane.xlu1 %1609 }
 0x881   : > { %3358 = vrcp.f32 %v1610_v7 }
 0x884   : > { %v1822_v24 = vpop.permute.xlu1 %1821 }
 0x887   : > { %v3357_v19 = vpop.eup %3356 }
 0x888   : > { %v1629_v48 = vmul.f32 %v3357_v19, %v4185_v55  ;;  %v1826_v56 = vpop.permute.xlu1 %1825 }
 0x88b   : > { %v3359_v53 = vpop.eup %3358 }
 0x88c   : > { %v1628_v1 = vmul.f32 %v3359_v53, %v4189_v20  ;;  %v1828_v20 = vpop.permute.xlu0 %1827  ;;  %v1830_v55 = vpop.permute.xlu1 %1829 }
 0x88e   : > { %2880 = vmatprep.mubr.msk.f32.mxu1 %vm649_vm3, %v1628_v1 }
 0x88f   : > { %2881 = vmatmul.mubr.msk.f32.gmra.mrb[30].mxu1 %vm649_vm3, %v1629_v48 }
 0x890   : > { %2899 = vmatprep.mubr.msk.f32.mxu1 %vm495_vm1, %v1816_v44 }
 0x893   : > { %2900 = vmatmul.mubr.msk.f32.vlgmr.msra.gmra.mrb[32].mxu1 %vm495_vm1, %v1818_v54 }
 0x894   : > { %2902 = vmatprep.mubr.msk.f32.mxu1 %vm495_vm1, %v1820_v46 }
 0x897   : > { %2903 = vmatmul.mubr.msk.f32.gmra.mrb[34].mxu1 %vm495_vm1, %v1822_v24 }
 0x898   : > { %2905 = vmatprep.mubr.msk.f32.mxu1 %vm495_vm1, %v1824_v16 }
 0x89b   : > { %2906 = vmatmul.mubr.msk.f32.gmra.mrb[36].mxu1 %vm495_vm1, %v1826_v56 }
 0x89c   : > { %2908 = vmatprep.mubr.msk.f32.mxu1 %vm495_vm1, %v1828_v20 }
 0x89f   : > { %2909 = vmatmul.mubr.msk.f32.gmra.mrb[38].mxu1 %vm495_vm1, %v1830_v55 }
 0x8f0   : > { %v4237_v58 = vpop.f32.mrb[24].mxu1 }
 0x8f1   : > { %v4239_v60 = vpop.f32.mrb[25].mxu1 }
 0x929   : > { %v4241_v11 = vpop.f32.mrb[26].mxu1 }
 0x92a   : > { %v4243_v49 = vpop.f32.mrb[27].mxu1 }
 0x931   : > { %v4245_v39 = vpop.f32.mrb[28].mxu1 }
 0x932   : > { %v4247_v43 = vpop.f32.mrb[29].mxu1 }
 0x962   : > { %v4249_v17 = vpop.f32.mrb[30].mxu1 }
 0x963   : > { %v4251_v2 = vpop.f32.mrb[31].mxu1 }
 0x966   : > { %v2901_v41 = vpop.f32.mrb[32].mxu1 }
 0x967   : > { %v1953_v57 = vpop.f32.mrb[33].mxu1  ;;  %v1995_v59 = vsel %vm649_vm3, %v2901_v41, -inf }
 0x968   : > { %1996 = vmax.xlane.f32.xlu1 %v1995_v59  ;;  %v1992_v61 = vsel %vm649_vm3, %v1953_v57, -inf }
 0x969   : > { %1993 = vmax.xlane.f32.xlu0 %v1992_v61 }
 0x96a   : > { %v2904_v42 = vpop.f32.mrb[34].mxu1 }
 0x96b   : > { %v1963_v14 = vpop.f32.mrb[35].mxu1  ;;  %v2001_v51 = vsel %vm649_vm3, %v2904_v42, -inf }
 0x96c   : > { %v1998_v47 = vsel %vm649_vm3, %v1963_v14, -inf }
 0x96d   : > { %2002 = vmax.xlane.f32.xlu0 %v2001_v51 }
 0x96e   : > { %v2907_v63 = vpop.f32.mrb[36].mxu1 }
 0x96f   : > { %v1973_v8 = vpop.f32.mrb[37].mxu1  ;;  %v2007_v12 = vsel %vm649_vm3, %v2907_v63, -inf }
 0x970   : > { %2008 = vmax.xlane.f32.xlu1 %v2007_v12  ;;  %v2004_v50 = vsel %vm649_vm3, %v1973_v8, -inf }
 0x971   : > { %1999 = vmax.xlane.f32.xlu0 %v1998_v47 }
 0x972   : > { %v2910_v22 = vpop.f32.mrb[38].mxu1 }
 0x973   : > { %v1983_v10 = vpop.f32.mrb[39].mxu1  ;;  %v2013_v62 = vsel %vm649_vm3, %v2910_v22, -inf }
 0x974   : > { %2014 = vmax.xlane.f32.xlu1 %v2013_v62  ;;  %v2010_v4 = vsel %vm649_vm3, %v1983_v10, -inf }
 0x975   : > { %2005 = vmax.xlane.f32.xlu0 %v2004_v50 }
 0x979   : > { %2011 = vmax.xlane.f32.xlu0 %v2010_v4 }
 0x985   : > { %3250 = vrot.lane.b32.xlu1 %v3775_v32, %s3459_s4 }
 0x98f   : > { %3245 = vrot.lane.b32.xlu0 %v3773_v26, %s3459_s4 }
 0x9f5   : > { %v1997_v6 = vpop.xlane.xlu1 %1996 }
 0x9f6   : > { %v2017_v13 = vsub.f32 %v2901_v41, %v1997_v6  ;;  %v1994_v40 = vpop.xlane.xlu0 %1993 }
 0x9f7   : > { %v2016_v52 = vsub.f32 %v1953_v57, %v1994_v40 }
 0x9f8   : > { %v2026_v25 = vmul.f32 1.442695, %v2017_v13 }
 0x9f9   : > { %v2024_v28 = vmul.f32 1.442695, %v2016_v52 }
 0x9fa   : > { %3360 = vpow2.f32 %v2026_v25  ;;  %v2003_v54 = vpop.xlane.xlu0 %2002 }
 0x9fb   : > { %3362 = vpow2.f32 %v2024_v28  ;;  %v2019_v18 = vsub.f32 %v2904_v42, %v2003_v54 }
 0x9fd   : > { %v2030_v7 = vmul.f32 1.442695, %v2019_v18  ;;  %v2009_v44 = vpop.xlane.xlu1 %2008 }
 0x9fe   : > { %v2021_v19 = vsub.f32 %v2907_v63, %v2009_v44  ;;  %v2000_v53 = vpop.xlane.xlu0 %1999 }
 0x9ff   : > { %3364 = vpow2.f32 %v2030_v7  ;;  %v2018_v1 = vsub.f32 %v1963_v14, %v2000_v53 }
 0xa00   : > { %v2034_v32 = vmul.f32 1.442695, %v2021_v19 }
 0xa01   : > { %v2028_v48 = vmul.f32 1.442695, %v2018_v1  ;;  %v2015_v46 = vpop.xlane.xlu1 %2014 }
 0xa02   : > { %3366 = vpow2.f32 %v2034_v32  ;;  %v2023_v26 = vsub.f32 %v2910_v22, %v2015_v46  ;;  %v2006_v24 = vpop.xlane.xlu0 %2005 }
 0xa03   : > { %3368 = vpow2.f32 %v2028_v48  ;;  %v2020_v16 = vsub.f32 %v1973_v8, %v2006_v24 }
 0xa04   : > { %v4265_v56 = vpop.eup %3360  ;;  %v2038_v20 = vmul.f32 1.442695, %v2023_v26 }
 0xa05   : > { %v4267_v55 = vpop.eup %3362  ;;  %v2032_v41 = vmul.f32 1.442695, %v2020_v16  ;;  %v2043_v57 = vsel %vm649_vm3, %v4265_v56, 0.0  ;;  %v3251_v51 = vpop.permute.xlu1 %3250 }
 0xa06   : > { %3370 = vpow2.f32 %v2038_v20  ;;  %2044 = vadd.xlane.f32.xlu1 %v2043_v57  ;;  %v2012_v59 = vpop.xlane.xlu0 %2011  ;;  %v2040_v61 = vsel %vm649_vm3, %v4267_v55, 0.0  ;;  %v3253_v50 = vunpack.i.h.bf16 %v3251_v51  ;;  %v3252_v4 = vunpack.i.l.bf16 %v3251_v51 }
 0xa07   : > { %3372 = vpow2.f32 %v2032_v41  ;;  %v2022_v42 = vsub.f32 %v1983_v10, %v2012_v59  ;;  %2041 = vadd.xlane.f32.xlu0 %v2040_v61 }
 0xa08   : > { %v3087_v25 = vpack.c.bf16 %v3253_v50, %v3252_v4 }
 0xa09   : > { %v4273_v14 = vpop.eup %3364  ;;  %v2036_v63 = vmul.f32 1.442695, %v2022_v42 }
 0xa0a   : > { %v3246_v8 = vpop.permute.xlu0 %3245  ;;  %v2049_v12 = vsel %vm649_vm3, %v4273_v14, 0.0 }
 0xa0b   : > { %3374 = vpow2.f32 %v2036_v63  ;;  %v3248_v47 = vunpack.i.h.bf16 %v3246_v8  ;;  %v3247_v22 = vunpack.i.l.bf16 %v3246_v8  ;;  %2050 = vadd.xlane.f32.xlu1 %v2049_v12 }
 0xa0c   : > { %v4277_v62 = vpop.eup %3366 }
 0xa0d   : > { %v4279_v6 = vpop.eup %3368  ;;  %v3083_v10 = vpack.c.bf16 %v3248_v47, %v3247_v22  ;;  %v2055_v13 = vsel %vm649_vm3, %v4277_v62, 0.0 }
 0xa0e   : > { %v2046_v40 = vsel %vm649_vm3, %v4279_v6, 0.0 }
 0xa0f   : > { %2056 = vadd.xlane.f32.xlu1 %v2055_v13  ;;  %2047 = vadd.xlane.f32.xlu0 %v2046_v40 }
 0xa10   : > { %v4285_v52 = vpop.eup %3370  ;;  %3084 = vmatprep.subr.bf16.mxu0 %v3083_v10 }
 0xa11   : > { %v4287_v28 = vpop.eup %3372  ;;  %3086 = vmatpush3.bf16.msra.mxu0 %v3083_v10  ;;  %v2061_v54 = vsel %vm649_vm3, %v4285_v52, 0.0 }
 0xa12   : > { %3088 = vmatprep.subr.bf16.mxu0 %v3087_v25  ;;  %v2052_v18 = vsel %vm649_vm3, %v4287_v28, 0.0 }
 0xa13   : > { %2062 = vadd.xlane.f32.xlu1 %v2061_v54  ;;  %2053 = vadd.xlane.f32.xlu0 %v2052_v18 }
 0xa15   : > { %v4293_v7 = vpop.eup %3374  ;;  %3090 = vmatpush3.bf16.msra.mxu0 %v3087_v25 }
 0xa16   : > { %v2058_v44 = vsel %vm649_vm3, %v4293_v7, 0.0 }
 0xa17   : > { %2059 = vadd.xlane.f32.xlu1 %v2058_v44 }
 0xa28   : > { %3260 = vrot.lane.b32.xlu1 %v3779_v45, %s3459_s4 }
 0xa29   : > { %3255 = vrot.lane.b32.xlu0 %v3777_v36, %s3459_s4 }
 0xa2c   : > { %2243 = vrot.lane.b32.xlu1 %v4083_v15, %s3459_s4 }
 0xa2d   : > { %2241 = vrot.lane.b32.xlu0 %v4085_v9, %s3459_s4 }
 0xa30   : > { %2247 = vrot.lane.b32.xlu1 %v4087_v27, %s3459_s4 }
 0xa31   : > { %2245 = vrot.lane.b32.xlu0 %v4089_v30, %s3459_s4 }
 0xa34   : > { %2251 = vrot.lane.b32.xlu1 %v4091_v21, %s3459_s4 }
 0xa35   : > { %2249 = vrot.lane.b32.xlu0 %v4093_v34, %s3459_s4 }
 0xa38   : > { %2255 = vrot.lane.b32.xlu1 %v4095_v38, %s3459_s4 }
 0xa39   : > { %2253 = vrot.lane.b32.xlu0 %v4097_v23, %s3459_s4  ;;  %s161_s4 = sand.u32 1, %s3448_s13  }
 0xa3a   : > { %s2442_s20 = sshll.u32 %s161_s4, 6  ;;  %s4413_s29 = scalar_lea.sflag [#allocation4], %s161_s4 }
 0xa3b   : > { %s4367_s24 = scalar_lea.vmem [#allocation3], %s2442_s20 }
 0xa3c   : > { %2275 = vrot.lane.b32.xlu1 %v4237_v58, %s3461_s9  ;;  %s2376_s26 = sshll.u32 %s4367_s24, 4  ;;  %s4404_s26 = int_to_ptr.vmem [resolvable:$true] %s2376_s26 }
 0xa3d   : > { %2273 = vrot.lane.b32.xlu0 %v4239_v60, %s3461_s9  ;;  %s3394_s30 = scalar_lea.vmem %s4404_s26, 1024  ;;  %p3401_p0 = scmp.lt.s32.totalorder %s4404_s26, %s3399_s6 }
 0xa3e   : > { %p3395_p11 = scmp.ne.s32.totalorder %s4404_s26, %s3394_s30  ;;  %p3402_p1 = scmp.lt.s32.totalorder %s3400_s7, %s3394_s30 }
 0xa40   : > { %2279 = vrot.lane.b32.xlu1 %v4241_v11, %s3461_s9  ;;  %p3396_p12 = pnand %p3395_p11, %p3523_p5  ;;  %p3403_p2 = por %p3402_p1, %p3401_p0 }
 0xa41   : > { %2277 = vrot.lane.b32.xlu0 %v4243_v49, %s3461_s9 }
 0xa42   : > { %p3397_p13 = pneg %p3396_p12 }
 0xa44   : > { %2283 = vrot.lane.b32.xlu1 %v4245_v39, %s3461_s9  ;;  %p3404_p3 = pnand %p3403_p2, %p3397_p13 }
 0xa45   : > { %2281 = vrot.lane.b32.xlu0 %v4247_v43, %s3461_s9 }
 0xa48   : > { %2287 = vrot.lane.b32.xlu1 %v4249_v17, %s3461_s9 }
 0xa49   : > { %2285 = vrot.lane.b32.xlu0 %v4251_v2, %s3461_s9 }
 0xa93   : > { %v2045_v36 = vpop.xlane.xlu1 %2044 }
 0xa94   : > { %v2042_v45 = vpop.xlane.xlu0 %2041 }
 0xa95   : > { %3376 = vrcp.f32 %v2042_v45 }
 0xa96   : > { %3378 = vrcp.f32 %v2045_v36 }
 0xa98   : > { %v2051_v15 = vpop.xlane.xlu1 %2050 }
 0xa9c   : > { %v2057_v9 = vpop.xlane.xlu1 %2056  ;;  %v2048_v27 = vpop.xlane.xlu0 %2047 }
 0xa9d   : > { %3380 = vrcp.f32 %v2048_v27 }
 0xa9e   : > { %3382 = vrcp.f32 %v2051_v15 }
 0xa9f   : > { %v3377_v30 = vpop.eup %3376 }
 0xaa0   : > { %v2063_v21 = vpop.xlane.xlu1 %2062  ;;  %v2054_v34 = vpop.xlane.xlu0 %2053  ;;  %v2072_v38 = vmul.f32 %v3377_v30, %v4267_v55 }
 0xaa1   : > { %3384 = vrcp.f32 %v2054_v34  ;;  %v3379_v19 = vpop.eup %3378 }
 0xaa2   : > { %2927 = vmatprep.mubr.msk.f32.mxu0 %vm649_vm3, %v2072_v38  ;;  %3386 = vrcp.f32 %v2057_v9  ;;  %v2073_v1 = vmul.f32 %v3379_v19, %v4265_v56 }
 0xaa4   : > { %v2060_v23 = vpop.xlane.xlu1 %2059  ;;  %v3256_v58 = vpop.permute.xlu0 %3255 }
 0xaa5   : > { %v3258_v60 = vunpack.i.h.bf16 %v3256_v58  ;;  %v3257_v11 = vunpack.i.l.bf16 %v3256_v58  ;;  %3388 = vrcp.f32 %v2060_v23 }
 0xaa6   : > { %3390 = vrcp.f32 %v2063_v21 }
 0xaa7   : > { %v3091_v49 = vpack.c.bf16 %v3258_v60, %v3257_v11  ;;  %v3381_v53 = vpop.eup %3380 }
 0xaa8   : > { %v3261_v39 = vpop.permute.xlu1 %3260  ;;  %v3383_v32 = vpop.eup %3382  ;;  %v2074_v48 = vmul.f32 %v3381_v53, %v4279_v6 }
 0xaa9   : > { %v3263_v43 = vunpack.i.h.bf16 %v3261_v39  ;;  %v3262_v17 = vunpack.i.l.bf16 %v3261_v39  ;;  %3092 = vmatprep.subr.bf16.mxu0 %v3091_v49  ;;  %v2075_v26 = vmul.f32 %v3383_v32, %v4273_v14  ;;  %v2242_v22 = vpop.permute.xlu0 %2241 }
 0xaaa   : > { %3094 = vmatpush3.bf16.msra.mxu0 %v3091_v49  ;;  %v2329_v45 = vsel %vm495_vm1, %v3911_v29, %v2242_v22 }
 0xaab   : > { %v3095_v2 = vpack.c.bf16 %v3263_v43, %v3262_v17  ;;  %v3385_v46 = vpop.eup %3384 }
 0xaac   : > { %v3387_v24 = vpop.eup %3386  ;;  %v2076_v16 = vmul.f32 %v3385_v46, %v4287_v28  ;;  %v2244_v47 = vpop.permute.xlu1 %2243 }
 0xaad   : > { %3096 = vmatprep.subr.bf16.mxu0 %v3095_v2  ;;  %v2077_v56 = vmul.f32 %v3387_v24, %v4277_v62  ;;  %v2246_v50 = vpop.permute.xlu0 %2245  ;;  %v2330_v36 = vsel %vm495_vm1, %v3909_v37, %v2244_v47 }
 0xaae   : > { %3098 = vmatpush3.bf16.msra.mxu0 %v3095_v2  ;;  %v2331_v34 = vsel %vm495_vm1, %v3915_v31, %v2246_v50 }
 0xaaf   : > { %v3389_v20 = vpop.eup %3388 }
 0xab0   : > { %v3391_v55 = vpop.eup %3390  ;;  %v2078_v41 = vmul.f32 %v3389_v20, %v4293_v7  ;;  %v2248_v62 = vpop.permute.xlu1 %2247 }
 0xab1   : > { %2928 = vmatmul.mubr.msk.f32.vlgmr.msra.gmra.mrb[40].mxu0 %vm649_vm3, %v2073_v1  ;;  %v2079_v57 = vmul.f32 %v3391_v55, %v4285_v52  ;;  %v2250_v6 = vpop.permute.xlu0 %2249  ;;  %v2332_v29 = vsel %vm495_vm1, %v3913_v35, %v2248_v62 }
 0xab2   : > { %2930 = vmatprep.mubr.msk.f32.mxu0 %vm649_vm3, %v2074_v48  ;;  %v2333_v31 = vsel %vm495_vm1, %v3919_v0, %v2250_v6 }
 0xab4   : > { %v2252_v4 = vpop.permute.xlu1 %2251 }
 0xab5   : > { %2931 = vmatmul.mubr.msk.f32.gmra.mrb[42].mxu0 %vm649_vm3, %v2075_v26  ;;  %v2254_v13 = vpop.permute.xlu0 %2253  ;;  %v2334_v35 = vsel %vm495_vm1, %v3917_v33, %v2252_v4 }
 0xab6   : > { %2933 = vmatprep.mubr.msk.f32.mxu0 %vm649_vm3, %v2076_v16  ;;  %v2335_v0 = vsel %vm495_vm1, %v3923_v5, %v2254_v13 }
 0xab8   : > { %v2256_v10 = vpop.permute.xlu1 %2255 }
 0xab9   : > { %2934 = vmatmul.mubr.msk.f32.gmra.mrb[44].mxu0 %vm649_vm3, %v2077_v56  ;;  %v2274_v52 = vpop.permute.xlu0 %2273  ;;  %v2336_v53 = vsel %vm495_vm1, %v3921_v3, %v2256_v10 }
 0xaba   : > { %2936 = vmatprep.mubr.msk.f32.mxu0 %vm649_vm3, %v2078_v41  ;;  %v2337_v27 = vsel %vm649_vm3, %v2329_v45, %v2274_v52 }
 0xabc   : > { %v2276_v40 = vpop.permute.xlu1 %2275 }
 0xabd   : > { %2937 = vmatmul.mubr.msk.f32.gmra.mrb[46].mxu0 %vm649_vm3, %v2079_v57  ;;  %v2278_v28 = vpop.permute.xlu0 %2277  ;;  %v2338_v15 = vsel %vm649_vm3, %v2330_v36, %v2276_v40 }
 0xabe   : > { %v2339_v58 = vsel %vm649_vm3, %v2331_v34, %v2278_v28 }
 0xac0   : > { %v2280_v25 = vpop.permute.xlu1 %2279 }
 0xac1   : > { %v2282_v18 = vpop.permute.xlu0 %2281  ;;  %v2340_v38 = vsel %vm649_vm3, %v2332_v29, %v2280_v25 }
 0xac2   : > { %v2341_v17 = vsel %vm649_vm3, %v2333_v31, %v2282_v18 }
 0xac4   : > { %v2284_v54 = vpop.permute.xlu1 %2283 }
 0xac5   : > { %v2286_v44 = vpop.permute.xlu0 %2285  ;;  %v2342_v39 = vsel %vm649_vm3, %v2334_v35, %v2284_v54 }
 0xac6   : > { %v2343_v3 = vsel %vm649_vm3, %v2335_v0, %v2286_v44 }
 0xac8   : > { %v2288_v7 = vpop.permute.xlu1 %2287 }
 0xac9   : > { %v2344_v1 = vsel %vm649_vm3, %v2336_v53, %v2288_v7 }
 0xb84   : > { %v2929_v59 = vpop.f32.mrb[40].mxu0 }
 0xb85   : > { %2307 = vrot.lane.b32.xlu1 %v2929_v59, %s3460_s8  ;;  %v2194_v61 = vpop.f32.mrb[41].mxu0 }
 0xb86   : > { %2305 = vrot.lane.b32.xlu0 %v2194_v61, %s3460_s8 }
 0xb88   : > { %v2932_v42 = vpop.f32.mrb[42].mxu0 }
 0xb89   : > { %2311 = vrot.lane.b32.xlu1 %v2932_v42, %s3460_s8  ;;  %v2204_v14 = vpop.f32.mrb[43].mxu0 }
 0xb8a   : > { %2309 = vrot.lane.b32.xlu0 %v2204_v14, %s3460_s8 }
 0xb8c   : > { %v2935_v51 = vpop.f32.mrb[44].mxu0 }
 0xb8d   : > { %2315 = vrot.lane.b32.xlu1 %v2935_v51, %s3460_s8  ;;  %v2214_v63 = vpop.f32.mrb[45].mxu0 }
 0xb8e   : > { %2313 = vrot.lane.b32.xlu0 %v2214_v63, %s3460_s8 }
 0xb90   : > { %v2938_v8 = vpop.f32.mrb[46].mxu0 }
 0xb91   : > { %2319 = vrot.lane.b32.xlu1 %v2938_v8, %s3460_s8  ;;  %v2224_v12 = vpop.f32.mrb[47].mxu0 }
 0xb92   : > { %2317 = vrot.lane.b32.xlu0 %v2224_v12, %s3460_s8 }
 0xbf7   : > { %v2308_v9 = vpop.permute.xlu1 %2307 }
 0xbf8   : > { %v2347_v30 = vsel %vm2345_vm4, %v2338_v15, %v2308_v9  ;;  %v2306_v21 = vpop.permute.xlu0 %2305 }
 0xbf9   : > { %2355 = vst [vmem:[%s4367_s24 + $0x8] sm:$0xff] %v2347_v30  ;;  %v2346_v37 = vsel %vm2345_vm4, %v2337_v27, %v2306_v21 }
 0xbfa   : > { %2354 = vst [vmem:[%s4367_s24] sm:$0xff] %v2346_v37 }
 0xbfb   : > { %v2312_v23 = vpop.permute.xlu1 %2311 }
 0xbfc   : > { %v2349_v60 = vsel %vm2345_vm4, %v2340_v38, %v2312_v23  ;;  %v2310_v11 = vpop.permute.xlu0 %2309 }
 0xbfd   : > { %2357 = vst [vmem:[%s4367_s24 + $0x18] sm:$0xff] %v2349_v60  ;;  %v2348_v49 = vsel %vm2345_vm4, %v2339_v58, %v2310_v11 }
 0xbfe   : > { %2356 = vst [vmem:[%s4367_s24 + $0x10] sm:$0xff] %v2348_v49 }
 0xbff   : > { %v2316_v43 = vpop.permute.xlu1 %2315 }
 0xc00   : > { %v2351_v2 = vsel %vm2345_vm4, %v2342_v39, %v2316_v43  ;;  %v2314_v19 = vpop.permute.xlu0 %2313 }
 0xc01   : > { %2359 = vst [vmem:[%s4367_s24 + $0x28] sm:$0xff] %v2351_v2  ;;  %v2350_v33 = vsel %vm2345_vm4, %v2341_v17, %v2314_v19 }
 0xc02   : > { %2358 = vst [vmem:[%s4367_s24 + $0x20] sm:$0xff] %v2350_v33 }
 0xc03   : > { %v2320_v32 = vpop.permute.xlu1 %2319 }
 0xc04   : > { %v2353_v48 = vsel %vm2345_vm4, %v2344_v1, %v2320_v32  ;;  %v2318_v46 = vpop.permute.xlu0 %2317 }
 0xc05   : > { %2361 = vst [vmem:[%s4367_s24 + $0x38] sm:$0xff] %v2353_v48  ;;  %v2352_v5 = vsel %vm2345_vm4, %v2343_v3, %v2318_v46 }
 0xc06   : > { %2360 = vst [vmem:[%s4367_s24 + $0x30] sm:$0xff] %v2352_v5 }
 0xc07   : > { %3407 = shalt.err (!%p3404_p3)
}
 0xc08   : > { %s3408_s8 = scalar_lea.hbm %s4402_s16, 1024  ;;  %s3412_s11 = scalar_lea.hbm %s4457_s3, 2048 }
 0xc09   : > { %p3409_p4 = scmp.ne.s32.totalorder %s4402_s16, %s3408_s8  ;;  %p3413_p9 = scmp.lt.u32.totalorder %s4402_s16, %s4457_s3 }
 0xc0a   : > { %p3414_p10 = scmp.lt.u32.totalorder %s3412_s11, %s3408_s8  ;;  %p3416_p12 = scmp.lt.u32.totalorder %s3408_s8, %s4402_s16 }
 0xc0b   : > { %p3410_p7 = pnand %p3409_p4, %p3523_p5 }
 0xc0c   : > { %p3415_p11 = por %p3414_p10, %p3413_p9 }
 0xc0d   : > { %p3411_p8 = pneg %p3410_p7 }
 0xc0e   : > { %p3417_p13 = por %p3416_p12, %p3415_p11 }
 0xc10   : > { %p3418_p0 = pnand %p3417_p13, %p3411_p8 }
 0xc12   : > { %3421 = shalt.err (!%p3418_p0)
}
 0xc13   : > { %s3463_s4 = smov 128   ;;  %s3464_s20 = smov 8  }
 0xc14   : > { %3099 = dma.vmem_to_hbm [thread:$0]  (%p3523_p5), %s4404_s26, 1024, %s4402_s16, %s4413_s29, %s3463_s4, %s3463_s4, %s3464_s20  }
 0xc15 PF: > { %p3105_p1 = scmp.ge.s32.totalorder %s3456_s15, 2  ;;  %s2391_s24 = sand.u32 1, %s3444_s12  }
 0xc16   : > { %s2392_s25 = scalar_lea.sflag [#allocation4], %s2391_s24 }
 0xc17   : > { %p3102_p2 = pnand %p3105_p1, %p3527_p6 }
 0xc19   : > { %3439 = dma.done.wait (!%p3102_p2), %s2392_s25, 1024  }
 0xc1a   : > { %3441 = vsyncadd (!%p3102_p2), %s2392_s25, 4294966272  ;;  %p13_p3 = scmp.ge.s32.totalorder %s3510_s18, 4   ;;  %s4464_s12 = smov %s3448_s13 }
 0xc1b   : > { %s4465_s13 = smov %s3452_s14  ;;  %s4466_s14 = smov %s3521_s21 }
 0xc1c   : > { %s4467_s15 = smov %s3510_s18  ;;  %15 = sbr.rel (!%p13_p3) target bundleno = 3 (0x3), region = 67 }
 0xc23   :  { %2397 = vsyncpa [#allocation4], 1 }
 0xc24   :  { %2399 = vsyncpa [#allocation4 + $0x1], 1 }

</bundles_post_ra>
